<compile_context>
chip_gen: v7x
topology: tpu7x:2x2x1
jax: 0.10.0
libtpu: 0.0.40
codegen_flags: <defaults>
</compile_context>

<pallas_src>
import math
from functools import partial

import jax
import jax.numpy as jnp
from jax import lax
from jax.experimental import pallas as pl
from jax.experimental.pallas import tpu as pltpu


# ----------------------------------------------------------------------------
# Kernel: one batch element.  out[b] = bias + sum_{taps} W_tap @ X_tap
# ----------------------------------------------------------------------------
def _downsample_kernel(w_ref, b_ref, ee_ref, eo_ref, oe_ref, oo_ref, o_ref,
                       *, ho, wo, c_in):
    # w_ref : (9, C_out, C_in)      per-tap weight matrices (resident in VMEM)
    # b_ref : (C_out, 1)            bias
    # ee_ref: (1, C_in, Ho+1, Wo+1) x_pad[2i,   2j  ]
    # eo_ref: (1, C_in, Ho+1, Wo)   x_pad[2i,   2j+1]
    # oe_ref: (1, C_in, Ho,   Wo+1) x_pad[2i+1, 2j  ]
    # oo_ref: (1, C_in, Ho,   Wo)   x_pad[2i+1, 2j+1]
    # o_ref : (1, C_out, Ho*Wo)
    n = ho * wo
    c_out = o_ref.shape[1]

    ee = ee_ref[0]
    eo = eo_ref[0]
    oe = oe_ref[0]
    oo = oo_ref[0]

    # Tap table in (kh, kw) = t-major order: (parity array, dh, dw) such that
    # x_pad[2i+kh, 2j+kw] == parity[i+dh, j+dw].
    taps = (
        (ee, 0, 0), (eo, 0, 0), (ee, 0, 1),   # kh = 0
        (oe, 0, 0), (oo, 0, 0), (oe, 0, 1),   # kh = 1
        (ee, 1, 0), (eo, 1, 0), (ee, 1, 1),   # kh = 2
    )

    # Bias folded into the accumulator init (no separate epilogue add).
    acc = jnp.broadcast_to(b_ref[...].astype(jnp.float32), (c_out, n))
    for t, (xp, dh, dw) in enumerate(taps):
        win = lax.slice(xp, (0, dh, dw), (c_in, dh + ho, dw + wo))
        acc = acc + jnp.dot(
            w_ref[t], win.reshape(c_in, n), preferred_element_type=jnp.float32
        )
    o_ref[0] = acc.astype(o_ref.dtype)


# ----------------------------------------------------------------------------
# DownSample forward
# ----------------------------------------------------------------------------
def downsample_forward(x, weight, bias):
    """x: (B, C, H, W); weight: (C_out, C_in, 3, 3); bias: (C_out,)."""
    B, C, H, W = x.shape
    C_out, C_in, KH, KW = weight.shape
    assert C_in == C and (KH, KW) == (3, 3)

    # F.pad(x, (0, 1, 0, 1)): one row at the bottom, one column on the right.
    x_pad = jnp.pad(x, ((0, 0), (0, 0), (0, 1), (0, 1)))
    Hp, Wp = H + 1, W + 1
    Ho = (Hp - 3) // 2 + 1
    Wo = (Wp - 3) // 2 + 1
    N = Ho * Wo

    # Even/odd parity deinterleave (4 arrays, 1x total input size).  Each of
    # the nine stride-2 taps becomes a contiguous (Ho, Wo) window of one of
    # these, so no 2.25x im2col buffer ever hits HBM.
    ee = x_pad[:, :, 0::2, 0::2][:, :, : Ho + 1, : Wo + 1]
    eo = x_pad[:, :, 0::2, 1::2][:, :, : Ho + 1, : Wo]
    oe = x_pad[:, :, 1::2, 0::2][:, :, : Ho, : Wo + 1]
    oo = x_pad[:, :, 1::2, 1::2][:, :, : Ho, : Wo]

    # Per-tap (C_out, C_in) weight matrices, tap-major t = kh*3 + kw, matching
    # the tap table inside the kernel.  No in-kernel operand transposes.
    w9 = jnp.transpose(weight, (2, 3, 0, 1)).reshape(9, C_out, C_in)
    b_col = bias.reshape(C_out, 1)

    kernel = partial(_downsample_kernel, ho=Ho, wo=Wo, c_in=C)

    out = pl.pallas_call(
        kernel,
        out_shape=jax.ShapeDtypeStruct((B, C_out, N), x.dtype),
        grid=(B,),
        in_specs=[
            # Weight / bias: constant block index -> fetched once, stays in VMEM.
            pl.BlockSpec((9, C_out, C_in), lambda b: (0, 0, 0)),
            pl.BlockSpec((C_out, 1), lambda b: (0, 0)),
            # Parity arrays: full per-batch spatial extent (block = array dims,
            # so the (8,128) divisibility rule does not apply).
            pl.BlockSpec((1, C, Ho + 1, Wo + 1), lambda b: (b, 0, 0, 0)),
            pl.BlockSpec((1, C, Ho + 1, Wo), lambda b: (b, 0, 0, 0)),
            pl.BlockSpec((1, C, Ho, Wo + 1), lambda b: (b, 0, 0, 0)),
            pl.BlockSpec((1, C, Ho, Wo), lambda b: (b, 0, 0, 0)),
        ],
        out_specs=pl.BlockSpec((1, C_out, N), lambda b: (b, 0, 0)),
        compiler_params=pltpu.CompilerParams(
            dimension_semantics=("parallel",),
            vmem_limit_bytes=64 * 1024 * 1024,
        ),
    )(w9, b_col, ee, eo, oe, oo)

    return out.reshape(B, C_out, Ho, Wo)


# ----------------------------------------------------------------------------
# Pure-JAX reference (same math) for a sanity check
# ----------------------------------------------------------------------------
def downsample_reference(x, weight, bias):
    x_pad = jnp.pad(x, ((0, 0), (0, 0), (0, 1), (0, 1)))
    out = lax.conv_general_dilated(
        x_pad, weight, window_strides=(2, 2), padding="VALID",
        dimension_numbers=("NCHW", "OIHW", "NCHW"),
    )
    return out + bias[None, :, None, None]


if __name__ == "__main__":
    B, C, H, W = 2, 4, 16, 16  # batch, channels, height, width

    key = jax.random.PRNGKey(0)
    kx, kw, kb = jax.random.split(key, 3)

    x = jax.random.normal(kx, (B, C, H, W), jnp.float32)
    # nn.Conv2d default init: U(-bound, bound), bound = 1/sqrt(C_in * kH * kW)
    bound = 1.0 / math.sqrt(C * 3 * 3)
    weight = jax.random.uniform(kw, (C, C, 3, 3), jnp.float32, -bound, bound)
    bias = jax.random.uniform(kb, (C,), jnp.float32, -bound, bound)

    out = jax.block_until_ready(downsample_forward(x, weight, bias))
    ref = jax.block_until_ready(downsample_reference(x, weight, bias))

    assert out.shape == ref.shape, (out.shape, ref.shape)
    assert jnp.allclose(out, ref, atol=1e-5, rtol=1e-5), "mismatch vs reference"

    print("KERNEL_OK")
</pallas_src>

<mosaic_0001>
module attributes {stable_mosaic.version = 11 : i64} {
  func.func @_downsample_kernel(%arg0: i32, %arg1: memref<9x4x4xf32, #tpu.memory_space<vmem>>, %arg2: memref<4x1xf32, #tpu.memory_space<vmem>>, %arg3: memref<1x4x9x9xf32, #tpu.memory_space<vmem>>, %arg4: memref<1x4x9x8xf32, #tpu.memory_space<vmem>>, %arg5: memref<1x4x8x9xf32, #tpu.memory_space<vmem>>, %arg6: memref<1x4x8x8xf32, #tpu.memory_space<vmem>>, %arg7: memref<1x4x64xf32, #tpu.memory_space<vmem>>) attributes {dimension_semantics = [#tpu.dimension_semantics<parallel>], iteration_bounds = array<i64: 2>, scalar_prefetch = 0 : i64, scratch_operands = 0 : i64, tpu.core_type = #tpu.core_type<tc>, window_params = [{pipeline_mode = #tpu.pipeline_mode<synchronous>, transform_indices = @transform_0, window_bounds = array<i64: 9, 4, 4>}, {pipeline_mode = #tpu.pipeline_mode<synchronous>, transform_indices = @transform_1, window_bounds = array<i64: 4, 1>}, {transform_indices = @transform_2, window_bounds = array<i64: 1, 4, 9, 9>}, {transform_indices = @transform_3, window_bounds = array<i64: 1, 4, 9, 8>}, {transform_indices = @transform_4, window_bounds = array<i64: 1, 4, 8, 9>}, {transform_indices = @transform_5, window_bounds = array<i64: 1, 4, 8, 8>}, {transform_indices = @transform_6, window_bounds = array<i64: 1, 4, 64>}]} {
    %c0 = arith.constant 0 : index
    %c0_0 = arith.constant 0 : index
    %c0_1 = arith.constant 0 : index
    %c0_2 = arith.constant 0 : index
    %0 = vector.load %arg3[%c0, %c0_0, %c0_1, %c0_2] : memref<1x4x9x9xf32, #tpu.memory_space<vmem>>, vector<1x4x9x9xf32>
    %1 = vector.shape_cast %0 : vector<1x4x9x9xf32> to vector<4x9x9xf32>
    %c0_3 = arith.constant 0 : index
    %c0_4 = arith.constant 0 : index
    %c0_5 = arith.constant 0 : index
    %c0_6 = arith.constant 0 : index
    %2 = vector.load %arg4[%c0_3, %c0_4, %c0_5, %c0_6] : memref<1x4x9x8xf32, #tpu.memory_space<vmem>>, vector<1x4x9x8xf32>
    %3 = vector.shape_cast %2 : vector<1x4x9x8xf32> to vector<4x9x8xf32>
    %c0_7 = arith.constant 0 : index
    %c0_8 = arith.constant 0 : index
    %c0_9 = arith.constant 0 : index
    %c0_10 = arith.constant 0 : index
    %4 = vector.load %arg5[%c0_7, %c0_8, %c0_9, %c0_10] : memref<1x4x8x9xf32, #tpu.memory_space<vmem>>, vector<1x4x8x9xf32>
    %5 = vector.shape_cast %4 : vector<1x4x8x9xf32> to vector<4x8x9xf32>
    %c0_11 = arith.constant 0 : index
    %c0_12 = arith.constant 0 : index
    %c0_13 = arith.constant 0 : index
    %c0_14 = arith.constant 0 : index
    %6 = vector.load %arg6[%c0_11, %c0_12, %c0_13, %c0_14] : memref<1x4x8x8xf32, #tpu.memory_space<vmem>>, vector<1x4x8x8xf32>
    %7 = vector.shape_cast %6 : vector<1x4x8x8xf32> to vector<4x8x8xf32>
    %c0_15 = arith.constant 0 : index
    %c0_16 = arith.constant 0 : index
    %8 = vector.load %arg2[%c0_15, %c0_16] : memref<4x1xf32, #tpu.memory_space<vmem>>, vector<4x1xf32>
    %9 = vector.shape_cast %8 : vector<4x1xf32> to vector<4x1xf32>
    %10 = vector.broadcast %9 : vector<4x1xf32> to vector<4x64xf32>
    %11 = vector.extract_strided_slice %1 {offsets = [0, 0, 0], sizes = [4, 8, 8], strides = [1, 1, 1]} : vector<4x9x9xf32> to vector<4x8x8xf32>
    %c0_17 = arith.constant 0 : index
    %c0_18 = arith.constant 0 : index
    %c0_19 = arith.constant 0 : index
    %12 = vector.load %arg1[%c0_17, %c0_18, %c0_19] : memref<9x4x4xf32, #tpu.memory_space<vmem>>, vector<1x4x4xf32>
    %13 = vector.shape_cast %12 : vector<1x4x4xf32> to vector<4x4xf32>
    %14 = vector.shape_cast %11 : vector<4x8x8xf32> to vector<4x64xf32>
    %cst = arith.constant dense<0.000000e+00> : vector<4x64xf32>
    %15 = tpu.matmul %13, %14, %cst {dimension_numbers = #tpu.dot_dimension_numbers<[1], [0], [0], [1], [0, 0, 1, 1], [], []>} : vector<4x4xf32>, vector<4x64xf32>, vector<4x64xf32> -> vector<4x64xf32>
    %16 = arith.addf %10, %15 : vector<4x64xf32>
    %17 = vector.extract_strided_slice %3 {offsets = [0, 0, 0], sizes = [4, 8, 8], strides = [1, 1, 1]} : vector<4x9x8xf32> to vector<4x8x8xf32>
    %c1 = arith.constant 1 : index
    %c0_20 = arith.constant 0 : index
    %c0_21 = arith.constant 0 : index
    %18 = vector.load %arg1[%c1, %c0_20, %c0_21] : memref<9x4x4xf32, #tpu.memory_space<vmem>>, vector<1x4x4xf32>
    %19 = vector.shape_cast %18 : vector<1x4x4xf32> to vector<4x4xf32>
    %20 = vector.shape_cast %17 : vector<4x8x8xf32> to vector<4x64xf32>
    %cst_22 = arith.constant dense<0.000000e+00> : vector<4x64xf32>
    %21 = tpu.matmul %19, %20, %cst_22 {dimension_numbers = #tpu.dot_dimension_numbers<[1], [0], [0], [1], [0, 0, 1, 1], [], []>} : vector<4x4xf32>, vector<4x64xf32>, vector<4x64xf32> -> vector<4x64xf32>
    %22 = arith.addf %16, %21 : vector<4x64xf32>
    %23 = vector.extract_strided_slice %1 {offsets = [0, 0, 1], sizes = [4, 8, 8], strides = [1, 1, 1]} : vector<4x9x9xf32> to vector<4x8x8xf32>
    %c2 = arith.constant 2 : index
    %c0_23 = arith.constant 0 : index
    %c0_24 = arith.constant 0 : index
    %24 = vector.load %arg1[%c2, %c0_23, %c0_24] : memref<9x4x4xf32, #tpu.memory_space<vmem>>, vector<1x4x4xf32>
    %25 = vector.shape_cast %24 : vector<1x4x4xf32> to vector<4x4xf32>
    %26 = vector.shape_cast %23 : vector<4x8x8xf32> to vector<4x64xf32>
    %cst_25 = arith.constant dense<0.000000e+00> : vector<4x64xf32>
    %27 = tpu.matmul %25, %26, %cst_25 {dimension_numbers = #tpu.dot_dimension_numbers<[1], [0], [0], [1], [0, 0, 1, 1], [], []>} : vector<4x4xf32>, vector<4x64xf32>, vector<4x64xf32> -> vector<4x64xf32>
    %28 = arith.addf %22, %27 : vector<4x64xf32>
    %29 = vector.extract_strided_slice %5 {offsets = [0, 0, 0], sizes = [4, 8, 8], strides = [1, 1, 1]} : vector<4x8x9xf32> to vector<4x8x8xf32>
    %c3 = arith.constant 3 : index
    %c0_26 = arith.constant 0 : index
    %c0_27 = arith.constant 0 : index
    %30 = vector.load %arg1[%c3, %c0_26, %c0_27] : memref<9x4x4xf32, #tpu.memory_space<vmem>>, vector<1x4x4xf32>
    %31 = vector.shape_cast %30 : vector<1x4x4xf32> to vector<4x4xf32>
    %32 = vector.shape_cast %29 : vector<4x8x8xf32> to vector<4x64xf32>
    %cst_28 = arith.constant dense<0.000000e+00> : vector<4x64xf32>
    %33 = tpu.matmul %31, %32, %cst_28 {dimension_numbers = #tpu.dot_dimension_numbers<[1], [0], [0], [1], [0, 0, 1, 1], [], []>} : vector<4x4xf32>, vector<4x64xf32>, vector<4x64xf32> -> vector<4x64xf32>
    %34 = arith.addf %28, %33 : vector<4x64xf32>
    %35 = vector.extract_strided_slice %7 {offsets = [0, 0, 0], sizes = [4, 8, 8], strides = [1, 1, 1]} : vector<4x8x8xf32> to vector<4x8x8xf32>
    %c4 = arith.constant 4 : index
    %c0_29 = arith.constant 0 : index
    %c0_30 = arith.constant 0 : index
    %36 = vector.load %arg1[%c4, %c0_29, %c0_30] : memref<9x4x4xf32, #tpu.memory_space<vmem>>, vector<1x4x4xf32>
    %37 = vector.shape_cast %36 : vector<1x4x4xf32> to vector<4x4xf32>
    %38 = vector.shape_cast %35 : vector<4x8x8xf32> to vector<4x64xf32>
    %cst_31 = arith.constant dense<0.000000e+00> : vector<4x64xf32>
    %39 = tpu.matmul %37, %38, %cst_31 {dimension_numbers = #tpu.dot_dimension_numbers<[1], [0], [0], [1], [0, 0, 1, 1], [], []>} : vector<4x4xf32>, vector<4x64xf32>, vector<4x64xf32> -> vector<4x64xf32>
    %40 = arith.addf %34, %39 : vector<4x64xf32>
    %41 = vector.extract_strided_slice %5 {offsets = [0, 0, 1], sizes = [4, 8, 8], strides = [1, 1, 1]} : vector<4x8x9xf32> to vector<4x8x8xf32>
    %c5 = arith.constant 5 : index
    %c0_32 = arith.constant 0 : index
    %c0_33 = arith.constant 0 : index
    %42 = vector.load %arg1[%c5, %c0_32, %c0_33] : memref<9x4x4xf32, #tpu.memory_space<vmem>>, vector<1x4x4xf32>
    %43 = vector.shape_cast %42 : vector<1x4x4xf32> to vector<4x4xf32>
    %44 = vector.shape_cast %41 : vector<4x8x8xf32> to vector<4x64xf32>
    %cst_34 = arith.constant dense<0.000000e+00> : vector<4x64xf32>
    %45 = tpu.matmul %43, %44, %cst_34 {dimension_numbers = #tpu.dot_dimension_numbers<[1], [0], [0], [1], [0, 0, 1, 1], [], []>} : vector<4x4xf32>, vector<4x64xf32>, vector<4x64xf32> -> vector<4x64xf32>
    %46 = arith.addf %40, %45 : vector<4x64xf32>
    %47 = vector.extract_strided_slice %1 {offsets = [0, 1, 0], sizes = [4, 8, 8], strides = [1, 1, 1]} : vector<4x9x9xf32> to vector<4x8x8xf32>
    %c6 = arith.constant 6 : index
    %c0_35 = arith.constant 0 : index
    %c0_36 = arith.constant 0 : index
    %48 = vector.load %arg1[%c6, %c0_35, %c0_36] : memref<9x4x4xf32, #tpu.memory_space<vmem>>, vector<1x4x4xf32>
    %49 = vector.shape_cast %48 : vector<1x4x4xf32> to vector<4x4xf32>
    %50 = vector.shape_cast %47 : vector<4x8x8xf32> to vector<4x64xf32>
    %cst_37 = arith.constant dense<0.000000e+00> : vector<4x64xf32>
    %51 = tpu.matmul %49, %50, %cst_37 {dimension_numbers = #tpu.dot_dimension_numbers<[1], [0], [0], [1], [0, 0, 1, 1], [], []>} : vector<4x4xf32>, vector<4x64xf32>, vector<4x64xf32> -> vector<4x64xf32>
    %52 = arith.addf %46, %51 : vector<4x64xf32>
    %53 = vector.extract_strided_slice %3 {offsets = [0, 1, 0], sizes = [4, 8, 8], strides = [1, 1, 1]} : vector<4x9x8xf32> to vector<4x8x8xf32>
    %c7 = arith.constant 7 : index
    %c0_38 = arith.constant 0 : index
    %c0_39 = arith.constant 0 : index
    %54 = vector.load %arg1[%c7, %c0_38, %c0_39] : memref<9x4x4xf32, #tpu.memory_space<vmem>>, vector<1x4x4xf32>
    %55 = vector.shape_cast %54 : vector<1x4x4xf32> to vector<4x4xf32>
    %56 = vector.shape_cast %53 : vector<4x8x8xf32> to vector<4x64xf32>
    %cst_40 = arith.constant dense<0.000000e+00> : vector<4x64xf32>
    %57 = tpu.matmul %55, %56, %cst_40 {dimension_numbers = #tpu.dot_dimension_numbers<[1], [0], [0], [1], [0, 0, 1, 1], [], []>} : vector<4x4xf32>, vector<4x64xf32>, vector<4x64xf32> -> vector<4x64xf32>
    %58 = arith.addf %52, %57 : vector<4x64xf32>
    %59 = vector.extract_strided_slice %1 {offsets = [0, 1, 1], sizes = [4, 8, 8], strides = [1, 1, 1]} : vector<4x9x9xf32> to vector<4x8x8xf32>
    %c8 = arith.constant 8 : index
    %c0_41 = arith.constant 0 : index
    %c0_42 = arith.constant 0 : index
    %60 = vector.load %arg1[%c8, %c0_41, %c0_42] : memref<9x4x4xf32, #tpu.memory_space<vmem>>, vector<1x4x4xf32>
    %61 = vector.shape_cast %60 : vector<1x4x4xf32> to vector<4x4xf32>
    %62 = vector.shape_cast %59 : vector<4x8x8xf32> to vector<4x64xf32>
    %cst_43 = arith.constant dense<0.000000e+00> : vector<4x64xf32>
    %63 = tpu.matmul %61, %62, %cst_43 {dimension_numbers = #tpu.dot_dimension_numbers<[1], [0], [0], [1], [0, 0, 1, 1], [], []>} : vector<4x4xf32>, vector<4x64xf32>, vector<4x64xf32> -> vector<4x64xf32>
    %64 = arith.addf %58, %63 : vector<4x64xf32>
    %c0_44 = arith.constant 0 : index
    %c0_45 = arith.constant 0 : index
    %c0_46 = arith.constant 0 : index
    %65 = vector.load %arg7[%c0_44, %c0_45, %c0_46] : memref<1x4x64xf32, #tpu.memory_space<vmem>>, vector<1x4x64xf32>
    %66 = vector.shape_cast %65 : vector<1x4x64xf32> to vector<4x64xf32>
    %67 = vector.shape_cast %64 : vector<4x64xf32> to vector<1x4x64xf32>
    tpu.vector_store %arg7[%c0_44, %c0_45, %c0_46], %67 {strides = array<i32>} : memref<1x4x64xf32, #tpu.memory_space<vmem>>, vector<1x4x64xf32>,
    return
  }
  func.func @transform_0(%arg0: i32) -> (i32, i32, i32) {
    %c0_i32 = arith.constant 0 : i32
    %c0_i32_0 = arith.constant 0 : i32
    %c0_i32_1 = arith.constant 0 : i32
    %c0_i32_2 = arith.constant 0 : i32
    return %c0_i32, %c0_i32_0, %c0_i32_1 : i32, i32, i32
  }
  func.func @transform_1(%arg0: i32) -> (i32, i32) {
    %c0_i32 = arith.constant 0 : i32
    %c0_i32_0 = arith.constant 0 : i32
    %c0_i32_1 = arith.constant 0 : i32
    return %c0_i32, %c0_i32_0 : i32, i32
  }
  func.func @transform_2(%arg0: i32) -> (i32, i32, i32, i32) {
    %c0_i32 = arith.constant 0 : i32
    %c0_i32_0 = arith.constant 0 : i32
    %c0_i32_1 = arith.constant 0 : i32
    %c0_i32_2 = arith.constant 0 : i32
    return %arg0, %c0_i32, %c0_i32_0, %c0_i32_1 : i32, i32, i32, i32
  }
  func.func @transform_3(%arg0: i32) -> (i32, i32, i32, i32) {
    %c0_i32 = arith.constant 0 : i32
    %c0_i32_0 = arith.constant 0 : i32
    %c0_i32_1 = arith.constant 0 : i32
    %c0_i32_2 = arith.constant 0 : i32
    return %arg0, %c0_i32, %c0_i32_0, %c0_i32_1 : i32, i32, i32, i32
  }
  func.func @transform_4(%arg0: i32) -> (i32, i32, i32, i32) {
    %c0_i32 = arith.constant 0 : i32
    %c0_i32_0 = arith.constant 0 : i32
    %c0_i32_1 = arith.constant 0 : i32
    %c0_i32_2 = arith.constant 0 : i32
    return %arg0, %c0_i32, %c0_i32_0, %c0_i32_1 : i32, i32, i32, i32
  }
  func.func @transform_5(%arg0: i32) -> (i32, i32, i32, i32) {
    %c0_i32 = arith.constant 0 : i32
    %c0_i32_0 = arith.constant 0 : i32
    %c0_i32_1 = arith.constant 0 : i32
    %c0_i32_2 = arith.constant 0 : i32
    return %arg0, %c0_i32, %c0_i32_0, %c0_i32_1 : i32, i32, i32, i32
  }
  func.func @transform_6(%arg0: i32) -> (i32, i32, i32) {
    %c0_i32 = arith.constant 0 : i32
    %c0_i32_0 = arith.constant 0 : i32
    %c0_i32_1 = arith.constant 0 : i32
    return %arg0, %c0_i32, %c0_i32_0 : i32, i32, i32
  }
}

</mosaic_0001>

<bundles_post_ra>
// kernel: tpu_custom_call.1
= control target key start
LH: loop header
LB: loop body
LE: loop exit
PB: predicated region body
PF: predicated region fallthrough
CT: control target
= control target key end

     0   :  { %s3750_s0 = inlined_call_operand.hbm [shape: f32[9,4,4], index: 0, kind: input, shape index: {}]   ;;  %s3751_s1 = inlined_call_operand.hbm [shape: f32[4,1], index: 1, kind: input, shape index: {}]   ;;  %s3752_s2 = inlined_call_operand.hbm [shape: f32[2,4,9,9], index: 2, kind: input, shape index: {}]   ;;  %s3753_s3 = inlined_call_operand.hbm [shape: f32[2,4,9,8], index: 3, kind: input, shape index: {}]   ;;  %s3754_s4 = inlined_call_operand.hbm [shape: f32[2,4,8,9], index: 4, kind: input, shape index: {}]   ;;  %s3755_s5 = inlined_call_operand.hbm [shape: f32[2,4,8,8], index: 5, kind: input, shape index: {}]   ;;  %s3756_s6 = inlined_call_operand.hbm [shape: f32[2,4,64], index: 6, kind: output, shape index: {}]  }
   0x1   :  { %3771 = sst [smem:[#allocation19_spill]] %s3750_s0 }
   0x2   :  { %3772 = sst [smem:[#allocation20_spill]] %s3752_s2 }
   0x3   :  { %3773 = sst [smem:[#allocation21_spill]] %s3753_s3 }
   0x4   :  { %3774 = sst [smem:[#allocation22_spill]] %s3754_s4 }
   0x5   :  { %11 = vsyncpa [#allocation3], 0 }
   0x6   :  { %12 = vsyncpa [#allocation6], 0 }
   0x7   :  { %13 = vsyncpa [#allocation4], 0 }
   0x8   :  { %15 = vsyncpa [#allocation4 + $0x1], 0  ;;  %s2888_s21 = smov 0   ;;  %s2890_s22 = smov 0  }
   0x9   :  { %s2892_s23 = smov 0   ;;  %s2894_s24 = smov 0  }
   0xa LB: > { %s2909_s25 = sadd.s32 4294967295, %s2827_s24   ;;  %s2336_s26 = sadd.s32 4294967294, %s2827_s24   ;;  %s2827_s24 = sphi %s2894_s24, %s3808_s24   ;;  %s2823_s23 = sphi %s2892_s23, %s3812_s23   ;;  %s2819_s22 = sphi %s2890_s22, %s3811_s22   ;;  %s2815_s21 = sphi %s2888_s21, %s3810_s21  }
   0xb   : > { %s2913_s27 = sadd.s32 1, %s2827_s24   ;;  %s70_s28 = sadd.s32 1, %s2823_s23 }
   0xc   : > { %3775 = sst [smem:[#allocation16_spill]] %s2913_s27  ;;  %s67_s29 = ssub.s32 %s2827_s24, %s2913_s27 }
   0xd   : > { %p77_p0 = scmp.ne.s32.totalorder %s2823_s23, %s2819_s22  ;;  %p68_p1 = scmp.eq.s32.totalorder %s67_s29, 0 }
   0xe   : > { %p78_p2 = scmp.eq.s32.totalorder %s2827_s24, 0  ;;  %p83_p3 = scmp.ne.s32.totalorder %s2819_s22, %s2815_s21 }
   0xf   : > { %p3757_p4 = scmp.eq.s32.totalorder %s2909_s25, 0  ;;  %p185_p7 = scmp.eq.s32.totalorder %s2909_s25, 1 }
  0x10   : > { %s2925_s30 = scalar_select %p68_p1, %s2823_s23, %s70_s28  }
  0x11   : > { %p2927_p5 = por %p78_p2, %p77_p0  ;;  %p2933_p6 = por %p3757_p4, %p83_p3 }
  0x12   : > { %3776 = sst [smem:[#allocation17_spill]] %s2925_s30  ;;  %p191_p8 = scmp.eq.s32.totalorder %s2336_s26, 1 }
  0x13   : > { %s3777_s7 = scalar_select %p2927_p5, 1, 0 }
  0x14   : > { %s3778_s8 = scalar_select %p2933_p6, 1, 0 }
  0x15   : > { %p2337_p9 = scmp.ge.s32.totalorder %s2827_s24, 1  ;;  %p198_p10 = scmp.lt.s32.totalorder %s2827_s24, 3 }
  0x16   : > { %p2940_p11 = por %p185_p7, %p77_p0  ;;  %p2944_p12 = por %p191_p8, %p83_p3 }
  0x17   : > { %p2948_p13 = pnand %p2337_p9, %p198_p10  ;;  %s2829_s12 = smov [#allocation2]  }
  0x18   : > { %s3779_s9 = scalar_select %p2940_p11, 1, 0 }
  0x19   : > { %s3780_s10 = scalar_select %p2944_p12, 1, 0 }
  0x1a   : > { %s3782_s11 = scalar_select %p2948_p13, 1, 0 }
  0x1b   : > { %3781 = sst [smem:[#allocation18_spill]] %s3780_s10  ;;  %p2484_p1 = pneg %p2948_p13 }
  0x1c   : > { %s210_s13 = sshll.u32 %s2829_s12, 4  ;;  %s235_s15 = sand.u32 1, %s2827_s24   ;;  %s211_s13 = int_to_ptr.vmem [resolvable:$true] %s210_s13 }
  0x1d   : > { %p2956_p2 = pnand %p2484_p1, %p3757_p4  ;;  %s3784_s0 = sld [smem:[#allocation19_spill]] }
  0x1f   : > { %s3783_s14 = scalar_select %p2956_p2, 1, 0 }
  0x20   : > { %p3764_p8 = pneg %p2956_p2 }
  0x23   : > { %s2577_s18 = scalar_lea.hbm %s3784_s0, 576 }
  0x24   : > { %p2578_p7 = scmp.ne.s32.totalorder %s3784_s0, %s2577_s18  ;;  %p2584_p1 = scmp.lt.u32.totalorder %s2577_s18, %s3784_s0 }
  0x26   : > { %p2580_p9 = pnand %p3764_p8, %p2578_p7 }
  0x28   : > { %p2581_p10 = pneg %p2580_p9 }
  0x2a   : > { %p2586_p0 = pnand %p2584_p1, %p2581_p10 }
  0x2c   : > { %2589 = shalt.err (!%p2586_p0)
}
  0x2d   : > { %s2590_s29 = scalar_lea.vmem %s211_s13, 576  ;;  %p2598_p11 = scmp.lt.s32.totalorder %s211_s13, %s211_s13 }
  0x2e   : > { %p2591_p4 = scmp.ne.s32.totalorder %s211_s13, %s2590_s29  ;;  %p2599_p6 = scmp.lt.s32.totalorder %s2590_s29, %s2590_s29 }
  0x30   : > { %p2593_p3 = pnand %p2591_p4, %p3764_p8  ;;  %p2600_p13 = por %p2599_p6, %p2598_p11 }
  0x32   : > { %p2594_p12 = pneg %p2593_p3 }
  0x34   : > { %p2601_p5 = pnand %p2600_p13, %p2594_p12 }
  0x36   : > { %2604 = shalt.err (!%p2601_p5)
}
  0x37   : > { %s2830_s12 = smov 64   ;;  %s2831_s16 = smov 4  }
  0x38   : > { %2487 = dma.hbm_to_vmem [thread:$0]  (!%p2956_p2), %s3784_s0, 576, %s211_s13, [#allocation3], %s2830_s12, %s2830_s12, %s2831_s16  }
  0x39   : > { %p3785_p4 = scmp.ne.s32.totalorder %s3777_s7, 0  ;;  %p3786_p0 = scmp.lt.s32.totalorder %s2827_s24, 2 }
  0x3a   : > { %s3763_s20 = sand.u32 1, %s2823_s23   ;;  %s2383_s28 = sshll.u32 %s2827_s24, 10 }
  0x3b   : > { %p2989_p3 = pnand %p3786_p0, %p3785_p4  ;;  %s2996_s26 = sshll.u32 %s3763_s20, 6 }
  0x3c   : > { %s3788_s2 = sld [smem:[#allocation20_spill]]  ;;  %s239_s7 = scalar_lea.vmem [#allocation7], %s2996_s26 }
  0x3d   : > { %s3787_s19 = scalar_select %p2989_p3, 1, 0 }
  0x3e   : > { %s246_s13 = sshll.u32 %s239_s7, 4  ;;  %s3009_s12 = scalar_lea.sflag [#allocation3], %s235_s15  ;;  %s3007_s13 = int_to_ptr.vmem [resolvable:$true] %s246_s13 }
  0x3f   : > { %p3015_p6 = pneg %p2989_p3 }
  0x41   : > { %s3789_s17 = scalar_select %p3015_p6, 1, 0 }
  0x42   : > { %s3004_s27 = scalar_lea.hbm %s3788_s2, %s2383_s28  ;;  %s2610_s29 = scalar_lea.hbm %s3788_s2, 2048 }
  0x43   : > { %s2605_s16 = scalar_lea.hbm %s3004_s27, 1024  ;;  %p2611_p13 = scmp.lt.u32.totalorder %s3004_s27, %s3788_s2 }
  0x44   : > { %p2606_p5 = scmp.ne.s32.totalorder %s3004_s27, %s2605_s16  ;;  %p2612_p7 = scmp.lt.u32.totalorder %s2610_s29, %s2605_s16 }
  0x45   : > { %p2614_p10 = scmp.lt.u32.totalorder %s2605_s16, %s3004_s27 }
  0x46   : > { %p2608_p11 = pnand %p3015_p6, %p2606_p5  ;;  %p2613_p9 = por %p2612_p7, %p2611_p13 }
  0x48   : > { %p2609_p12 = pneg %p2608_p11  ;;  %p2615_p1 = por %p2614_p10, %p2613_p9 }
  0x4a   : > { %p2616_p4 = pnand %p2615_p1, %p2609_p12 }
  0x4c   : > { %2619 = shalt.err (!%p2616_p4)
}
  0x4d   : > { %s2620_s15 = scalar_lea.vmem %s3007_s13, 1024  ;;  %s2832_s30 = smov [#allocation7]  }
  0x4e   : > { %p2621_p0 = scmp.ne.s32.totalorder %s3007_s13, %s2620_s15  ;;  %s2625_s18 = sshll.u32 %s2832_s30, 4  ;;  %s2626_s18 = int_to_ptr.vmem [resolvable:$false] %s2625_s18 }
  0x4f   : > { %s2627_s20 = scalar_lea.vmem %s2626_s18, 2048  ;;  %p2628_p8 = scmp.lt.s32.totalorder %s3007_s13, %s2626_s18 }
  0x50   : > { %p2623_p5 = pnand %p2621_p0, %p3015_p6  ;;  %p2629_p2 = scmp.lt.s32.totalorder %s2627_s20, %s2620_s15 }
  0x52   : > { %p2624_p11 = pneg %p2623_p5  ;;  %p2630_p13 = por %p2629_p2, %p2628_p8 }
  0x54   : > { %p2631_p7 = pnand %p2630_p13, %p2624_p11 }
  0x56   : > { %2634 = shalt.err (!%p2631_p7)
}
  0x57   : > { %s2833_s16 = smov 128   ;;  %s2834_s29 = smov 8  }
  0x58   : > { %2494 = dma.hbm_to_vmem [thread:$0]  (!%p2989_p3), %s3004_s27, 1024, %s3007_s13, %s3009_s12, %s2833_s16, %s2833_s16, %s2834_s29  }
  0x59   : > { %s3790_s3 = sld [smem:[#allocation21_spill]]  ;;  %s260_s18 = scalar_lea.vmem [#allocation8], %s2996_s26 }
  0x5a   : > { %s267_s20 = sshll.u32 %s260_s18, 4  ;;  %s3791_s0 = sand.u32 1, %s2823_s23   ;;  %s3050_s20 = int_to_ptr.vmem [resolvable:$true] %s267_s20 }
  0x5b   : > { %s3054_s2 = sshll.u32 %s3791_s0, 5 }
  0x5f   : > { %s3047_s30 = scalar_lea.hbm %s3790_s3, %s2383_s28  ;;  %s2640_s28 = scalar_lea.hbm %s3790_s3, 2048 }
  0x60   : > { %s2635_s10 = scalar_lea.hbm %s3047_s30, 1024  ;;  %p2641_p9 = scmp.lt.u32.totalorder %s3047_s30, %s3790_s3 }
  0x61   : > { %p2636_p2 = scmp.ne.s32.totalorder %s3047_s30, %s2635_s10  ;;  %p2642_p10 = scmp.lt.u32.totalorder %s2640_s28, %s2635_s10 }
  0x62   : > { %p2644_p4 = scmp.lt.u32.totalorder %s2635_s10, %s3047_s30 }
  0x63   : > { %p2638_p8 = pnand %p2636_p2, %p3015_p6  ;;  %p2643_p1 = por %p2642_p10, %p2641_p9 }
  0x65   : > { %p2639_p12 = pneg %p2638_p8  ;;  %p2645_p0 = por %p2644_p4, %p2643_p1 }
  0x67   : > { %p2646_p5 = pnand %p2645_p0, %p2639_p12 }
  0x69   : > { %2649 = shalt.err (!%p2646_p5)
}
  0x6a   : > { %s2650_s0 = scalar_lea.vmem %s3050_s20, 1024  ;;  %s2835_s26 = smov [#allocation8]  }
  0x6b   : > { %p2651_p11 = scmp.ne.s32.totalorder %s3050_s20, %s2650_s0  ;;  %s2655_s18 = sshll.u32 %s2835_s26, 4  ;;  %s2656_s18 = int_to_ptr.vmem [resolvable:$false] %s2655_s18 }
  0x6c   : > { %s2657_s27 = scalar_lea.vmem %s2656_s18, 2048  ;;  %p2658_p2 = scmp.lt.s32.totalorder %s3050_s20, %s2656_s18 }
  0x6d   : > { %p2653_p13 = pnand %p2651_p11, %p3015_p6  ;;  %p2659_p8 = scmp.lt.s32.totalorder %s2657_s27, %s2650_s0 }
  0x6f   : > { %p2654_p7 = pneg %p2653_p13  ;;  %p2660_p9 = por %p2659_p8, %p2658_p2 }
  0x71   : > { %p2661_p10 = pnand %p2660_p9, %p2654_p7 }
  0x73   : > { %2664 = shalt.err (!%p2661_p10)
}
  0x74   : > { %2497 = dma.hbm_to_vmem [thread:$0]  (!%p2989_p3), %s3047_s30, 1024, %s3050_s20, %s3009_s12, %s2833_s16, %s2833_s16, %s2834_s29  }
  0x75   : > { %s2385_s10 = sshll.u32 %s2827_s24, 9  ;;  %s3792_s4 = sld [smem:[#allocation22_spill]] }
  0x76   : > { %s281_s15 = scalar_lea.vmem [#allocation9], %s3054_s2 }
  0x77   : > { %s288_s0 = sshll.u32 %s281_s15, 4  ;;  %s3090_s0 = int_to_ptr.vmem [resolvable:$true] %s288_s0 }
  0x7b   : > { %s3087_s7 = scalar_lea.hbm %s3792_s4, %s2385_s10  ;;  %s2670_s18 = scalar_lea.hbm %s3792_s4, 1024 }
  0x7c   : > { %s2665_s26 = scalar_lea.hbm %s3087_s7, 512  ;;  %p2671_p0 = scmp.lt.u32.totalorder %s3087_s7, %s3792_s4 }
  0x7d   : > { %p2666_p12 = scmp.ne.s32.totalorder %s3087_s7, %s2665_s26  ;;  %p2672_p5 = scmp.lt.u32.totalorder %s2670_s18, %s2665_s26 }
  0x7e   : > { %p2674_p13 = scmp.lt.u32.totalorder %s2665_s26, %s3087_s7 }
  0x7f   : > { %p2668_p1 = pnand %p2666_p12, %p3015_p6  ;;  %p2673_p11 = por %p2672_p5, %p2671_p0 }
  0x81   : > { %p2669_p4 = pneg %p2668_p1  ;;  %p2675_p7 = por %p2674_p13, %p2673_p11 }
  0x83   : > { %p2676_p2 = pnand %p2675_p7, %p2669_p4 }
  0x85   : > { %2679 = shalt.err (!%p2676_p2)
}
  0x86   : > { %s2680_s28 = scalar_lea.vmem %s3090_s0, 512  ;;  %s2836_s15 = smov [#allocation9]  }
  0x87   : > { %p2681_p8 = scmp.ne.s32.totalorder %s3090_s0, %s2680_s28  ;;  %s2685_s30 = sshll.u32 %s2836_s15, 4  ;;  %s2686_s30 = int_to_ptr.vmem [resolvable:$false] %s2685_s30 }
  0x88   : > { %s2687_s20 = scalar_lea.vmem %s2686_s30, 1024  ;;  %p2688_p12 = scmp.lt.s32.totalorder %s3090_s0, %s2686_s30 }
  0x89   : > { %p2683_p9 = pnand %p2681_p8, %p3015_p6  ;;  %p2689_p1 = scmp.lt.s32.totalorder %s2687_s20, %s2680_s28 }
  0x8b   : > { %p2684_p10 = pneg %p2683_p9  ;;  %p2690_p0 = por %p2689_p1, %p2688_p12 }
  0x8d   : > { %p2691_p5 = pnand %p2690_p0, %p2684_p10 }
  0x8f   : > { %2694 = shalt.err (!%p2691_p5)
}
  0x90   : > { %2500 = dma.hbm_to_vmem [thread:$0]  (!%p2989_p3), %s3087_s7, 512, %s3090_s0, %s3009_s12, %s2833_s16, %s2833_s16, %s2834_s29  }
  0x91   : > { %s2837_s26 = smov [#allocation5]   ;;  %s3122_s28 = scalar_lea.hbm %s3755_s5, %s2385_s10 }
  0x92   : > { %s224_s18 = sshll.u32 %s2837_s26, 4  ;;  %s2695_s20 = scalar_lea.hbm %s3751_s1, 64  ;;  %s225_s18 = int_to_ptr.vmem [resolvable:$true] %s224_s18 }
  0x93   : > { %p2696_p4 = scmp.ne.s32.totalorder %s3751_s1, %s2695_s20  ;;  %p3793_p11 = scmp.ne.s32.totalorder %s3783_s14, 0 }
  0x94   : > { %p2702_p8 = scmp.lt.u32.totalorder %s2695_s20, %s3751_s1 }
  0x95   : > { %p3794_p13 = pneg %p3793_p11 }
  0x97   : > { %p2698_p7 = pnand %p2696_p4, %p3794_p13 }
  0x99   : > { %p2699_p2 = pneg %p2698_p7 }
  0x9b   : > { %p2704_p9 = pnand %p2702_p8, %p2699_p2 }
  0x9d   : > { %2707 = shalt.err (!%p2704_p9)
}
  0x9e   : > { %s2708_s10 = scalar_lea.vmem %s225_s18, 64  ;;  %p3795_p12 = pmov %p3794_p13 }
  0x9f   : > { %p2709_p10 = scmp.ne.s32.totalorder %s225_s18, %s2708_s10  ;;  %p2716_p5 = scmp.lt.s32.totalorder %s225_s18, %s225_s18 }
  0xa0   : > { %p2717_p3 = scmp.lt.s32.totalorder %s2708_s10, %s2708_s10 }
  0xa1   : > { %p2711_p1 = pnand %p2709_p10, %p3795_p12 }
  0xa2   : > { %p2718_p6 = por %p2717_p3, %p2716_p5 }
  0xa3   : > { %p2712_p0 = pneg %p2711_p1 }
  0xa5   : > { %p2719_p4 = pnand %p2718_p6, %p2712_p0 }
  0xa7   : > { %2722 = shalt.err (!%p2719_p4)
}
  0xa8   : > { %2490 = dma.hbm_to_vmem [thread:$0]  (!%p3793_p11), %s3751_s1, 64, %s225_s18, [#allocation6]  }
  0xa9   : > { %s302_s26 = scalar_lea.vmem [#allocation10], %s3054_s2  ;;  %s2723_s13 = scalar_lea.hbm %s3122_s28, 512 }
  0xaa   : > { %s309_s27 = sshll.u32 %s302_s26, 4  ;;  %p2724_p3 = scmp.ne.s32.totalorder %s3122_s28, %s2723_s13  ;;  %s3145_s27 = int_to_ptr.vmem [resolvable:$true] %s309_s27 }
  0xab   : > { %p3796_p6 = scmp.ne.s32.totalorder %s3789_s17, 0  ;;  %s2728_s30 = scalar_lea.hbm %s3755_s5, 1024 }
  0xac   : > { %p2729_p2 = scmp.lt.u32.totalorder %s3122_s28, %s3755_s5  ;;  %p2730_p8 = scmp.lt.u32.totalorder %s2728_s30, %s2723_s13 }
  0xad   : > { %p2726_p13 = pnand %p2724_p3, %p3796_p6  ;;  %p2732_p11 = scmp.lt.u32.totalorder %s2723_s13, %s3122_s28 }
  0xae   : > { %p2731_p9 = por %p2730_p8, %p2729_p2 }
  0xaf   : > { %p2727_p7 = pneg %p2726_p13 }
  0xb0   : > { %p2733_p10 = por %p2732_p11, %p2731_p9 }
  0xb2   : > { %p2734_p12 = pnand %p2733_p10, %p2727_p7 }
  0xb4   : > { %2737 = shalt.err (!%p2734_p12)
}
  0xb5   : > { %s2738_s2 = scalar_lea.vmem %s3145_s27, 512  ;;  %s2838_s18 = smov [#allocation10]  }
  0xb6   : > { %p2739_p1 = scmp.ne.s32.totalorder %s3145_s27, %s2738_s2  ;;  %s2743_s0 = sshll.u32 %s2838_s18, 4  ;;  %s2744_s0 = int_to_ptr.vmem [resolvable:$false] %s2743_s0 }
  0xb7   : > { %s2745_s10 = scalar_lea.vmem %s2744_s0, 1024  ;;  %p2746_p4 = scmp.lt.s32.totalorder %s3145_s27, %s2744_s0 }
  0xb8   : > { %p2741_p0 = pnand %p2739_p1, %p3796_p6  ;;  %p2747_p3 = scmp.lt.s32.totalorder %s2745_s10, %s2738_s2 }
  0xba   : > { %p2742_p5 = pneg %p2741_p0  ;;  %p2748_p13 = por %p2747_p3, %p2746_p4 }
  0xbc   : > { %p2749_p2 = pnand %p2748_p13, %p2742_p5 }
  0xbe   : > { %2752 = shalt.err (!%p2749_p2)
}
  0xbf   : > { %p3797_p7 = scmp.ne.s32.totalorder %s3787_s19, 0  ;;  %p3798_p6 = scmp.ne.s32.totalorder %s3782_s11, 0 }
  0xc0   : > { %p3799_p8 = scmp.eq.s32.totalorder (!%p3798_p6), %s2909_s25, 0 }
  0xc1   : > { %2503 = dma.hbm_to_vmem [thread:$0]  (!%p3797_p7), %s3122_s28, 512, %s3145_s27, %s3009_s12, %s2833_s16, %s2833_s16, %s2834_s29  }
  0xc2   : > { %321 = sbr.rel (%p3798_p6) target bundleno = 734 (0x2de), region = 44 }
  0xc9   : > { %2798 = dma.done.wait (%p3799_p8), [#allocation3], 576   ;;  %p3800_p9 = pmov %p3799_p8 }
  0xca   : > { %p3801_p11 = pmov %p3799_p8 }
  0xcb   : > { %2800 = vsyncadd (%p3800_p9), [#allocation3], 4294966720 }
  0xcc   : > { %2802 = dma.done.wait (%p3801_p11), [#allocation6], 64   ;;  %p3802_p10 = pmov %p3799_p8 }
  0xcd   : > { %s331_s19 = sand.u32 1, %s2909_s25   ;;  %s3184_s12 = sand.u32 1, %s2819_s22  }
  0xce   : > { %2804 = vsyncadd (%p3802_p10), [#allocation6], 4294967232  ;;  %s2356_s11 = sshll.u32 %s3184_s12, 6  ;;  %s332_s17 = scalar_lea.sflag [#allocation3], %s331_s19 }
  0xcf   : > { %s3189_s16 = scalar_lea.vmem [#allocation7], %s2356_s11  ;;  %p3803_p12 = scmp.ne.s32.totalorder %s3778_s8, 0 }
  0xd1   : > { %2806 = dma.done.wait (%p3803_p12), %s332_s17, 3072  }
  0xd2   : > { %2808 = vsyncadd (%p3803_p12), %s332_s17, 4294964224  ;;  %s2358_s29 = sshll.u32 %s3184_s12, 5  ;;  %v2839_v0 = vmov 0.0   ;;  %v2840_v1 = vmov 1983009808   ;;  %v442_v3 = vlaneseq  ;;  %s2841_s3 = smov 127  }
  0xd3   : > { %2425 = vmatprep.subr.mxu0 %v2839_v0  ;;  %2405 = vmatprep.subr.mxu1 %v2839_v0  ;;  %v440_v2 = vunpack.c.l.s4 %v2840_v1  ;;  %s353_s28 = scalar_lea.vmem [#allocation9], %s2358_s29  ;;  %s362_s8 = scalar_lea.vmem [#allocation10], %s2358_s29  ;;  %v3223_v14 = vld [vmem:[%s3189_s16 + $0x10] sm:$0xff]  ;;  %v3226_v15 = vld [vmem:[%s3189_s16] sm:$0xff]  ;;  %v409_v16 = vld [vmem:[%s3189_s16 + $0x18] sm:$0x1] }
  0xd4   : > { %v3198_v4 = vld [vmem:[%s353_s28 + $0x10] sm:$0xff]  ;;  %v3200_v5 = vld [vmem:[%s353_s28] sm:$0xff]  ;;  %v3210_v8 = vld [vmem:[%s353_s28 + $0x18] sm:$0xff]  ;;  %v443_v13 = vshrl.u32 %v442_v3, 7  ;;  %v2842_v19 = vmov 1934713408  }
  0xd5   : > { %1380 = vrot.lane.b32.xlu1 %v3198_v4, %s2841_s3  ;;  %1376 = vrot.lane.b32.xlu0 %v3200_v5, %s2841_s3  ;;  %v1008_v6 = vcombine.low %v3200_v5, %v3198_v4  ;;  %v1009_v7 = vcombine.high %v3200_v5, %v3198_v4  ;;  %v3212_v9 = vld [vmem:[%s353_s28 + $0x8] sm:$0xff]  ;;  %v441_v12 = vunpack.c.0.s8 %v440_v2  ;;  %v472_v20 = vunpack.c.l.s4 %v2842_v19  ;;  %v2571_v21 = vld [vmem:[%s362_s8] ss:$16 sps:$4 sm:$0xff]   ;;  %s3290_s4 = scalar_lea.vmem [#allocation8], %s2356_s11  ;;  %s2843_s26 = smov 16  }
  0xd6   : > { %v1024_v10 = vcombine.low %v3212_v9, %v3210_v8  ;;  %v1025_v11 = vcombine.high %v3212_v9, %v3210_v8  ;;  %v407_v18 = vld [vmem:[%s3189_s16 + $0x8] sm:$0x1]  ;;  %v3237_v23 = vld [vmem:[%s3189_s16 + $0x30] sm:$0xff]  ;;  %v3240_v24 = vld [vmem:[%s3189_s16 + $0x20] sm:$0xff]  ;;  %v1578_v25 = vrot.slane %v3223_v14, 1  ;;  %v1579_v26 = vrot.slane %v409_v16, 1 }
  0xd7   : > { %v3229_v17 = vsub.s32 %v441_v12, %v443_v13  ;;  %v2573_v22 = vld [vmem:[%s362_s8 + $0x8] ss:$16 sps:$4 sm:$0xff]   ;;  %v1575_v28 = vrot.slane %v3226_v15, 1  ;;  %v1576_v29 = vrot.slane %v407_v18, 1  ;;  %vm1574_vm0 = vcmask 1046528   ;;  %v3293_v55 = vld [vmem:[%s3290_s4] sm:$0xff] }
  0xd8   : > { %v413_v27 = vld [vmem:[%s3189_s16 + $0x38] sm:$0x1]  ;;  %v473_v30 = vunpack.c.0.s8 %v472_v20  ;;  %v411_v33 = vld [vmem:[%s3189_s16 + $0x28] sm:$0x1]  ;;  %v2575_v34 = vld [vmem:[%s362_s8 + $0x4] ss:$16 sps:$4 sm:$0xff]   ;;  %v3254_v39 = vsel %vm1574_vm0, %v1578_v25, %v1579_v26  ;;  %v453_v48 = vcombine.low %v3223_v14, %v3237_v23  ;;  %v437_v49 = vcombine.low %v3226_v15, %v3240_v24 }
  0xd9   : > { %1382 = vrot.lane.b32.xlu1 %v3210_v8, %s2841_s3  ;;  %1378 = vrot.lane.b32.xlu0 %v3212_v9, %s2841_s3  ;;  %v1198_v31 = vrot.slane %v2571_v21, %v3229_v17  ;;  %v1214_v32 = vrot.slane %v2573_v22, %v3229_v17  ;;  %v2576_v35 = vld [vmem:[%s362_s8 + $0xc] ss:$16 sps:$4 sm:$0xff]   ;;  %v1584_v36 = vrot.slane %v3237_v23, 1  ;;  %v1585_v37 = vrot.slane %v413_v27, 1  ;;  %v3298_v58 = vld [vmem:[%s3290_s4 + $0x10] sm:$0xff]  ;;  %s2844_s27 = smov 8  }
  0xda   : > { %v3257_v40 = vsel %vm1574_vm0, %v1575_v28, %v1576_v29  ;;  %v1581_v41 = vrot.slane %v3240_v24, 1  ;;  %v1582_v42 = vrot.slane %v411_v33, 1  ;;  %v3260_v43 = vsub.s32 %v473_v30, %v443_v13  ;;  %v3301_v59 = vld [vmem:[%s3290_s4 + $0x20] sm:$0xff]  ;;  %v3304_v60 = vld [vmem:[%s3290_s4 + $0x30] sm:$0xff]  ;;  %s2845_s13 = smov 32   ;;  %s2846_s14 = smov 24  }
  0xdb   : > { %v1222_v38 = vcombine.low %v1198_v31, %v1214_v32  ;;  %v1205_v44 = vrot.slane %v2575_v34, %v3229_v17  ;;  %v1221_v45 = vrot.slane %v2576_v35, %v3229_v17  ;;  %v1223_v46 = vcombine.high %v1198_v31, %v1214_v32  ;;  %s2847_s15 = smov 48   ;;  %s2848_s30 = smov 40  }
  0xdc   : > { %v3276_v50 = vsel %vm1574_vm0, %v1584_v36, %v1585_v37  ;;  %v3279_v51 = vsel %vm1574_vm0, %v1581_v41, %v1582_v42  ;;  %v461_v56 = vrot.slane %v453_v48, %v3229_v17  ;;  %v445_v57 = vrot.slane %v437_v49, %v3229_v17  ;;  %s2849_s20 = smov 56   ;;  %v415_v37 = vld [vmem:[%s3290_s4 + $0x8] sm:$0x1]  ;;  %v417_v41 = vld [vmem:[%s3290_s4 + $0x18] sm:$0x1]  ;;  %s2360_s7 = sshll.u32 %s3184_s12, 2 }
  0xdd   : > { %816 = vrot.lane.b32.xlu1 %v3223_v14, %s2841_s3  ;;  %814 = vrot.lane.b32.xlu0 %v3226_v15, %s2841_s3  ;;  %v3269_v47 = vrot.slane %v1222_v38, %v3260_v43  ;;  %v1238_v52 = vcombine.low %v1205_v44, %v1221_v45  ;;  %v1237_v53 = vrot.slane %v1223_v46, %v3260_v43  ;;  %v419_v42 = vld [vmem:[%s3290_s4 + $0x28] sm:$0x1]  ;;  %v1784_v46 = vrot.slane %v3298_v58, 1  ;;  %s2380_s2 = sshll.u32 %s2909_s25, 6  ;;  %s405_s18 = scalar_lea.vmem [#allocation11], %s2360_s7 }
  0xde   : > { %v3310_v61 = vrot.slane %v1008_v6, %v3229_v17  ;;  %v3316_v62 = vrot.slane %v1009_v7, %v3229_v17  ;;  %v1239_v63 = vcombine.high %v1205_v44, %v1221_v45  ;;  %v3322_v1 = vrot.slane %v1024_v10, %v3229_v17  ;;  %v421_v44 = vld [vmem:[%s3290_s4 + $0x38] sm:$0x1]  ;;  %s2187_s0 = sshll.u32 %s405_s18, 4  ;;  %s3706_s11 = scalar_lea.hbm %s3756_s6, %s2380_s2  ;;  %s3708_s0 = int_to_ptr.vmem [resolvable:$true] %s2187_s0 }
  0xdf   : > { %v1254_v54 = vcombine.high %v3269_v47, %v2839_v0  ;;  %v3328_v2 = vrot.slane %v1025_v11, %v3229_v17  ;;  %v1246_v3 = vrot.slane %v1238_v52, %v3260_v43  ;;  %v469_v6 = vcombine.low %v445_v57, %v461_v56  ;;  %s2174_s17 = scalar_lea.sflag [#allocation4], %s3184_s12  ;;  %s2753_s25 = scalar_lea.vmem %s3708_s0, 64 }
  0xe0   : > { %v1255_v4 = vcombine.high %v1237_v53, %v2839_v0  ;;  %v628_v5 = vcombine.low %v3293_v55, %v3301_v59  ;;  %v644_v7 = vcombine.low %v3298_v58, %v3304_v60  ;;  %v454_v8 = vcombine.high %v3223_v14, %v3237_v23  ;;  %p2754_p1 = scmp.ne.s32.totalorder %s3708_s0, %s2753_s25  ;;  %p3804_p0 = scmp.ne.s32.totalorder %s3779_s9, 0 }
  0xe1   : > { %820 = vrot.lane.b32.xlu1 %v3237_v23, %s2841_s3  ;;  %818 = vrot.lane.b32.xlu0 %v3240_v24, %s2841_s3  ;;  %v438_v9 = vcombine.high %v3226_v15, %v3240_v24  ;;  %v1253_v10 = vrot.slane %v1239_v63, %v3260_v43  ;;  %v470_v11 = vcombine.high %v445_v57, %v461_v56  ;;  %v1781_v45 = vrot.slane %v3293_v55, 1  ;;  %s2852_s16 = smov [#allocation11]  }
  0xe2   : > { %v1256_v12 = vcombine.high %v1246_v3, %v2839_v0  ;;  %v3345_v13 = vrot.slane %v469_v6, %v3260_v43  ;;  %v1041_v16 = vcombine.high %v3310_v61, %v3322_v1  ;;  %v1040_v18 = vcombine.low %v3310_v61, %v3322_v1  ;;  %p2755_p5 = pnand %p2754_p1, %p3804_p0  ;;  %s2757_s29 = sshll.u32 %s2852_s16, 4  ;;  %s2758_s29 = int_to_ptr.vmem [resolvable:$false] %s2757_s29 }
  0xe3   : > { %v636_v14 = vrot.slane %v628_v5, %v3229_v17  ;;  %v652_v15 = vrot.slane %v644_v7, %v3229_v17  ;;  %v1056_v19 = vcombine.low %v3316_v62, %v3328_v2  ;;  %v1607_v20 = vcombine.low %v3254_v39, %v3276_v50  ;;  %s2759_s28 = scalar_lea.vmem %s2758_s29, 128  ;;  %p2760_p3 = scmp.lt.s32.totalorder %s3708_s0, %s2758_s29 }
  0xe4   : > { %v452_v21 = vrot.slane %v438_v9, %v3229_v17  ;;  %v1591_v22 = vcombine.low %v3257_v40, %v3279_v51  ;;  %v1257_v23 = vcombine.high %v1253_v10, %v2839_v0  ;;  %v484_v24 = vrot.slane %v470_v11, %v3260_v43  ;;  %p2756_p4 = pneg %p2755_p5  ;;  %p2761_p13 = scmp.lt.s32.totalorder %s2759_s28, %s2753_s25 }
  0xe5   : > { %1981 = vrot.lane.b32.xlu1 %v3254_v39, %s2841_s3  ;;  %1979 = vrot.lane.b32.xlu0 %v3257_v40, %s2841_s3  ;;  %v468_v25 = vrot.slane %v454_v8, %v3229_v17  ;;  %v501_v26 = vcombine.high %v3345_v13, %v2839_v0  ;;  %v660_v27 = vcombine.low %v636_v14, %v652_v15  ;;  %v1787_v48 = vrot.slane %v3301_v59, 1 }
  0xe6   : > { %v1057_v28 = vcombine.high %v3316_v62, %v3328_v2  ;;  %v1615_v29 = vrot.slane %v1607_v20, %v3229_v17  ;;  %v502_v30 = vcombine.high %v484_v24, %v2839_v0  ;;  %v1599_v31 = vrot.slane %v1591_v22, %v3229_v17  ;;  %p2762_p2 = por %p2761_p13, %p2760_p3 }
  0xe7   : > { %v485_v32 = vcombine.low %v452_v21, %v468_v25  ;;  %v3377_v33 = vrot.slane %v660_v27, %v3260_v43  ;;  %v661_v38 = vcombine.high %v636_v14, %v652_v15  ;;  %v486_v52 = vcombine.high %v452_v21, %v468_v25 }
  0xe8   : > { %v1623_v36 = vcombine.low %v1599_v31, %v1615_v29  ;;  %v1782_v56 = vrot.slane %v415_v37, 1  ;;  %v1785_v57 = vrot.slane %v417_v41, 1  ;;  %v1788_v63 = vrot.slane %v419_v42, 1  ;;  %p2763_p7 = pnand %p2762_p2, %p2756_p4 }
  0xe9   : > { %1985 = vrot.lane.b32.xlu1 %v3276_v50, %s2841_s3  ;;  %1983 = vrot.lane.b32.xlu0 %v3279_v51, %s2841_s3  ;;  %v493_v34 = vrot.slane %v485_v32, %v3260_v43  ;;  %v692_v35 = vcombine.high %v3377_v33, %v2839_v0  ;;  %v1608_v6 = vcombine.high %v3254_v39, %v3276_v50  ;;  %vm2850_vm1 = vmmov 0  }
  0xea   : > { %v1592_v5 = vcombine.high %v3257_v40, %v3279_v51  ;;  %v629_v7 = vcombine.high %v3293_v55, %v3301_v59  ;;  %v645_v8 = vcombine.high %v3298_v58, %v3304_v60  ;;  %v500_v9 = vrot.slane %v486_v52, %v3260_v43  ;;  %2407 = vmatprep.mubr.msk.f32.mxu1 %vm2850_vm1, %v2839_v0 }
  0xeb   : > { %v503_v49 = vcombine.high %v493_v34, %v2839_v0  ;;  %v1624_v50 = vcombine.high %v1599_v31, %v1615_v29  ;;  %v1786_v40 = vsel %vm1574_vm0, %v1784_v46, %v1785_v57  ;;  %v1789_v51 = vsel %vm1574_vm0, %v1787_v48, %v1788_v63  ;;  %2427 = vmatprep.mubr.msk.f32.mxu0 %vm2850_vm1, %v2839_v0 }
  0xec   : > { %v1622_v58 = vrot.slane %v1608_v6, %v3229_v17  ;;  %v1606_v59 = vrot.slane %v1592_v5, %v3229_v17  ;;  %v643_v11 = vrot.slane %v629_v7, %v3229_v17  ;;  %v3472_v5 = vrot.slane %v1040_v18, %v3260_v43 }
  0xed   : > { %1263 = vrot.lane.b32.xlu1 %v1237_v53, %s2843_s26  ;;  %1259 = vrot.lane.b32.xlu0 %v1254_v54, %s2844_s27  ;;  %v1790_v53 = vrot.slane %v3304_v60, 1  ;;  %v3396_v54 = vrot.slane %v1623_v36, %v3260_v43  ;;  %v504_v60 = vcombine.high %v500_v9, %v2839_v0  ;;  %v1638_v14 = vrot.slane %v1624_v50, %v3260_v43 }
  0xee   : > { %v1064_v18 = vrot.slane %v1056_v19, %v3260_v43  ;;  %vm533_vm2 = vcmask 64512   ;;  %vm535_vm3 = vcmask 130048   ;;  %vm537_vm4 = vcmask 195584  }
  0xef   : > { %v1655_v39 = vcombine.high %v3396_v54, %v2839_v0  ;;  %vm539_vm5 = vcmask 261120   ;;  %vm541_vm6 = vcmask 326656   ;;  %vm543_vm7 = vcmask 392192  }
  0xf0   : > { %v1074_v61 = vcombine.high %v1064_v18, %v2839_v0  ;;  %vm545_vm8 = vcmask 457728   ;;  %vm551_vm9 = vcmask 1043456   ;;  %vm547_vm10 = vcmask 31744  }
  0xf1   : > { %1271 = vrot.lane.b32.xlu1 %v1246_v3, %s2845_s13  ;;  %1267 = vrot.lane.b32.xlu0 %v1255_v4, %s2846_s14  ;;  %v1791_v3 = vrot.slane %v421_v44, 1  ;;  %v675_v4 = vrot.slane %v661_v38, %v3260_v43  ;;  %vm2171_vm11 = vcmask 519168  }
  0xf3   : > { %v1792_v55 = vsel %vm1574_vm0, %v1790_v53, %v1791_v3  ;;  %v693_v21 = vcombine.high %v675_v4, %v2839_v0 }
  0xf4   : > { %v1813_v20 = vcombine.low %v1786_v40, %v1792_v55  ;;  %v1814_v42 = vcombine.high %v1786_v40, %v1792_v55 }
  0xf5   : > { %1279 = vrot.lane.b32.xlu1 %v1253_v10, %s2847_s15  ;;  %1275 = vrot.lane.b32.xlu0 %v1256_v12, %s2848_s30  ;;  %v1783_v10 = vsel %vm1574_vm0, %v1781_v45, %v1782_v56  ;;  %v659_v12 = vrot.slane %v645_v8, %v3229_v17  ;;  %v1640_v45 = vcombine.high %v1606_v59, %v1622_v58 }
  0xf6   : > { %v1797_v15 = vcombine.low %v1783_v10, %v1789_v51  ;;  %v1798_v37 = vcombine.high %v1783_v10, %v1789_v51  ;;  %v1055_v8 = vrot.slane %v1041_v16, %v3260_v43 }
  0xf7   : > { %v676_v22 = vcombine.low %v643_v11, %v659_v12  ;;  %v677_v31 = vcombine.high %v643_v11, %v659_v12  ;;  %v1654_v52 = vrot.slane %v1640_v45, %v3260_v43 }
  0xf8   : > { %v1805_v25 = vrot.slane %v1797_v15, %v3229_v17  ;;  %v1812_v48 = vrot.slane %v1798_v37, %v3229_v17 }
  0xf9   : > { %1283 = vrot.lane.b32.xlu1 %v1257_v23, %s2849_s20  ;;  %506 = vrot.lane.b32.xlu0 %v501_v26, %s2844_s27  ;;  %v1639_v23 = vcombine.low %v1606_v59, %v1622_v58  ;;  %v1821_v26 = vrot.slane %v1813_v20, %v3229_v17  ;;  %v684_v27 = vrot.slane %v676_v22, %v3260_v43 }
  0xfa   : > { %v691_v36 = vrot.slane %v677_v31, %v3260_v43  ;;  %v1658_v57 = vcombine.high %v1654_v52, %v2839_v0 }
  0xfb   : > { %v1647_v29 = vrot.slane %v1639_v23, %v3260_v43  ;;  %v694_v32 = vcombine.high %v684_v27, %v2839_v0  ;;  %v1830_v41 = vcombine.high %v1805_v25, %v1821_v26 }
  0xfc   : > { %v695_v44 = vcombine.high %v691_v36, %v2839_v0 }
  0xfd   : > { %514 = vrot.lane.b32.xlu1 %v502_v30, %s2846_s14  ;;  %510 = vrot.lane.b32.xlu0 %v484_v24, %s2843_s26  ;;  %v1656_v24 = vcombine.high %v1638_v14, %v2839_v0  ;;  %v1829_v30 = vcombine.low %v1805_v25, %v1821_v26  ;;  %v1844_v46 = vrot.slane %v1830_v41, %v3260_v43 }
  0xff   : > { %v1862_v53 = vcombine.high %v1844_v46, %v2839_v0 }
 0x101   : > { %518 = vrot.lane.b32.xlu1 %v493_v34, %s2845_s13  ;;  %697 = vrot.lane.b32.xlu0 %v692_v35, %s2844_s27  ;;  %v1657_v34 = vcombine.high %v1647_v29, %v2839_v0  ;;  %v3439_v35 = vrot.slane %v1829_v30, %v3260_v43 }
 0x103   : > { %v1861_v38 = vcombine.high %v3439_v35, %v2839_v0 }
 0x105   : > { %522 = vrot.lane.b32.xlu1 %v503_v49, %s2848_s30  ;;  %701 = vrot.lane.b32.xlu0 %v675_v4, %s2843_s26  ;;  %v1828_v49 = vrot.slane %v1814_v42, %v3229_v17 }
 0x107   : > { %v1845_v56 = vcombine.low %v1812_v48, %v1828_v49  ;;  %v1846_v3 = vcombine.high %v1812_v48, %v1828_v49 }
 0x109   : > { %526 = vrot.lane.b32.xlu1 %v500_v9, %s2847_s15  ;;  %1660 = vrot.lane.b32.xlu0 %v1655_v39, %s2844_s27  ;;  %v1853_v63 = vrot.slane %v1845_v56, %v3260_v43  ;;  %v1860_v6 = vrot.slane %v1846_v3, %v3260_v43  ;;  %v1072_v9 = vcombine.high %v3472_v5, %v2839_v0 }
 0x10a   : > { %v1073_v39 = vcombine.high %v1055_v8, %v2839_v0 }
 0x10b   : > { %v1863_v4 = vcombine.high %v1853_v63, %v2839_v0  ;;  %v1864_v7 = vcombine.high %v1860_v6, %v2839_v0 }
 0x10d   : > { %530 = vrot.lane.b32.xlu1 %v504_v60, %s2849_s20  ;;  %1664 = vrot.lane.b32.xlu0 %v1638_v14, %s2843_s26 }
 0x111   : > { %705 = vrot.lane.b32.xlu1 %v693_v21, %s2846_s14  ;;  %1668 = vrot.lane.b32.xlu0 %v1656_v24, %s2846_s14 }
 0x115   : > { %709 = vrot.lane.b32.xlu1 %v684_v27, %s2845_s13  ;;  %1672 = vrot.lane.b32.xlu0 %v1647_v29, %s2845_s13 }
 0x119   : > { %713 = vrot.lane.b32.xlu1 %v694_v32, %s2848_s30  ;;  %1676 = vrot.lane.b32.xlu0 %v1657_v34, %s2848_s30 }
 0x11d   : > { %717 = vrot.lane.b32.xlu1 %v691_v36, %s2847_s15  ;;  %1866 = vrot.lane.b32.xlu0 %v1861_v38, %s2844_s27 }
 0x121   : > { %721 = vrot.lane.b32.xlu1 %v695_v44, %s2849_s20  ;;  %1870 = vrot.lane.b32.xlu0 %v1844_v46, %s2843_s26 }
 0x125   : > { %1680 = vrot.lane.b32.xlu1 %v1654_v52, %s2847_s15  ;;  %1874 = vrot.lane.b32.xlu0 %v1862_v53, %s2846_s14 }
 0x129   : > { %1684 = vrot.lane.b32.xlu1 %v1658_v57, %s2849_s20  ;;  %1878 = vrot.lane.b32.xlu0 %v1853_v63, %s2845_s13 }
 0x12d   : > { %1886 = vrot.lane.b32.xlu1 %v1860_v6, %s2847_s15  ;;  %1882 = vrot.lane.b32.xlu0 %v1863_v4, %s2848_s30 }
 0x131   : > { %1890 = vrot.lane.b32.xlu1 %v1864_v7, %s2849_s20  ;;  %1077 = vrot.lane.b32.xlu0 %v1072_v9, %s2844_s27 }
 0x135   : > { %1085 = vrot.lane.b32.xlu1 %v1073_v39, %s2846_s14  ;;  %1081 = vrot.lane.b32.xlu0 %v1055_v8, %s2843_s26 }
 0x139   : > { %1089 = vrot.lane.b32.xlu1 %v1064_v18, %s2845_s13 }
 0x13d   : > { %1093 = vrot.lane.b32.xlu1 %v1074_v61, %s2848_s30 }
 0x147   : > { %v1381_v1 = vpop.permute.xlu1 %1380  ;;  %v1377_v16 = vpop.permute.xlu0 %1376 }
 0x148   : > { %v1388_v50 = vcombine.low %v1377_v16, %v1381_v1  ;;  %v1389_v10 = vcombine.high %v1377_v16, %v1381_v1 }
 0x14a   : > { %v1396_v59 = vrot.slane %v1388_v50, %v3229_v17  ;;  %v1403_v19 = vrot.slane %v1389_v10, %v3229_v17 }
 0x14b   : > { %v1383_v40 = vpop.permute.xlu1 %1382  ;;  %v1379_v51 = vpop.permute.xlu0 %1378 }
 0x14c   : > { %v1404_v55 = vcombine.low %v1379_v51, %v1383_v40  ;;  %v1405_v58 = vcombine.high %v1379_v51, %v1383_v40 }
 0x14e   : > { %v1412_v60 = vrot.slane %v1404_v55, %v3229_v17  ;;  %v1419_v11 = vrot.slane %v1405_v58, %v3229_v17 }
 0x14f   : > { %v817_v12 = vpop.permute.xlu1 %816  ;;  %v815_v14 = vpop.permute.xlu0 %814 }
 0x150   : > { %v1421_v15 = vcombine.high %v1396_v59, %v1412_v60  ;;  %v1437_v20 = vcombine.high %v1403_v19, %v1419_v11  ;;  %v1436_v23 = vcombine.low %v1403_v19, %v1419_v11  ;;  %v1420_v37 = vcombine.low %v1396_v59, %v1412_v60 }
 0x152   : > { %v1451_v21 = vrot.slane %v1437_v20, %v3260_v43  ;;  %v1435_v22 = vrot.slane %v1421_v15, %v3260_v43  ;;  %v1444_v41 = vrot.slane %v1436_v23, %v3260_v43  ;;  %v3518_v53 = vrot.slane %v1420_v37, %v3260_v43  ;;  %v1189_v23 = vld [vmem:[#allocation2 + $0x10] sm:$0xf] }
 0x153   : > { %v821_v24 = vpop.permute.xlu1 %820  ;;  %v819_v25 = vpop.permute.xlu0 %818 }
 0x154   : > { %v842_v26 = vcombine.low %v817_v12, %v821_v24  ;;  %v843_v27 = vcombine.high %v817_v12, %v821_v24  ;;  %v826_v29 = vcombine.low %v815_v14, %v819_v25  ;;  %v827_v30 = vcombine.high %v815_v14, %v819_v25  ;;  %1477 = vrot.lane.b32.xlu1 %v1451_v21, %s2847_s15 }
 0x155   : > { %1461 = vrot.lane.b32.xlu0 %v1435_v22, %s2843_s26  ;;  %v1452_v3 = vcombine.high %v3518_v53, %v2839_v0  ;;  %v1455_v7 = vcombine.high %v1451_v21, %v2839_v0  ;;  %v1453_v1 = vcombine.high %v1435_v22, %v2839_v0  ;;  %v1454_v58 = vcombine.high %v1444_v41, %v2839_v0 }
 0x156   : > { %v850_v31 = vrot.slane %v842_v26, %v3229_v17  ;;  %v857_v32 = vrot.slane %v843_v27, %v3229_v17  ;;  %v834_v34 = vrot.slane %v826_v29, %v3229_v17  ;;  %v841_v36 = vrot.slane %v827_v30, %v3229_v17 }
 0x157   : > { %v3507_v38 = vpop.permute.xlu1 %1981  ;;  %v3510_v42 = vpop.permute.xlu0 %1979 }
 0x158   : > { %v859_v44 = vcombine.high %v834_v34, %v850_v31  ;;  %v874_v45 = vcombine.low %v841_v36, %v857_v32  ;;  %v875_v46 = vcombine.high %v841_v36, %v857_v32  ;;  %v858_v9 = vcombine.low %v834_v34, %v850_v31 }
 0x159   : > { %1469 = vrot.lane.b32.xlu0 %v1444_v41, %s2845_s13 }
 0x15a   : > { %v882_v48 = vrot.slane %v874_v45, %v3260_v43  ;;  %v873_v49 = vrot.slane %v859_v44, %v3260_v43  ;;  %v889_v57 = vrot.slane %v875_v46, %v3260_v43  ;;  %v3547_v59 = vrot.slane %v858_v9, %v3260_v43  ;;  %v436_v9 = vld [vmem:[#allocation2] sm:$0xf] }
 0x15b   : > { %v3515_v52 = vpop.permute.xlu1 %1985  ;;  %v3520_v56 = vpop.permute.xlu0 %1983 }
 0x15c   : > { %907 = vrot.lane.b32.xlu1 %v882_v48, %s2845_s13  ;;  %v2007_v39 = vcombine.low %v3507_v38, %v3515_v52  ;;  %v1991_v18 = vcombine.low %v3510_v42, %v3520_v56  ;;  %v891_v10 = vcombine.high %v873_v49, %v2839_v0  ;;  %v892_v12 = vcombine.high %v882_v48, %v2839_v0 }
 0x15d   : > { %899 = vrot.lane.b32.xlu0 %v873_v49, %s2843_s26  ;;  %v890_v21 = vcombine.high %v3547_v59, %v2839_v0  ;;  %v2008_v25 = vcombine.high %v3507_v38, %v3515_v52  ;;  %v1992_v26 = vcombine.high %v3510_v42, %v3520_v56  ;;  %v893_v27 = vcombine.high %v889_v57, %v2839_v0 }
 0x15e   : > { %v2015_v40 = vrot.slane %v2007_v39, %v3229_v17  ;;  %v1999_v51 = vrot.slane %v1991_v18, %v3229_v17 }
 0x15f   : > { %v1264_v63 = vpop.permute.xlu1 %1263  ;;  %v1260_v6 = vpop.permute.xlu0 %1259  ;;  %v2022_v37 = vrot.slane %v2008_v25, %v3229_v17  ;;  %v2006_v38 = vrot.slane %v1992_v26, %v3229_v17 }
 0x160   : > { %915 = vrot.lane.b32.xlu1 %v889_v57, %s2847_s15  ;;  %v1286_v4 = vsel %vm533_vm2, %v3269_v47, %v1260_v6  ;;  %v2023_v14 = vcombine.low %v1999_v51, %v2015_v40  ;;  %v2024_v15 = vcombine.high %v1999_v51, %v2015_v40 }
 0x161   : > { %1457 = vrot.lane.b32.xlu0 %v1452_v3, %s2844_s27  ;;  %v1287_v8 = vsel %vm535_vm3, %v1286_v4, %v1264_v63  ;;  %v2040_v2 = vcombine.high %v2006_v38, %v2022_v37  ;;  %v2851_v63 = vmov 0   ;;  %v430_v4 = vld [vmem:[#allocation5] sm:$0xf] }
 0x162   : > { %v2038_v31 = vrot.slane %v2024_v15, %v3260_v43  ;;  %v3571_v32 = vrot.slane %v2023_v14, %v3260_v43  ;;  %2565 = vset.pattern.permute.xlu1 %v2851_v63  ;;  %2566 = vset.pattern.permute.xlu0 %v2851_v63 }
 0x163   : > { %v1272_v61 = vpop.permute.xlu1 %1271  ;;  %v1268_v16 = vpop.permute.xlu0 %1267  ;;  %v2054_v49 = vrot.slane %v2040_v2, %v3260_v43 }
 0x164   : > { %1481 = vrot.lane.b32.xlu1 %v1455_v7, %s2849_s20  ;;  %v1288_v47 = vsel %vm537_vm4, %v1287_v8, %v1268_v16  ;;  %v2055_v42 = vcombine.high %v3571_v32, %v2839_v0  ;;  %v2056_v46 = vcombine.high %v2038_v31, %v2839_v0 }
 0x165   : > { %1465 = vrot.lane.b32.xlu0 %v1453_v1, %s2846_s14  ;;  %v1289_v50 = vsel %vm539_vm5, %v1288_v47, %v1272_v61  ;;  %v2058_v61 = vcombine.high %v2054_v49, %v2839_v0 }
 0x167   : > { %v1280_v55 = vpop.permute.xlu1 %1279  ;;  %v1276_v19 = vpop.permute.xlu0 %1275 }
 0x168   : > { %903 = vrot.lane.b32.xlu1 %v891_v10, %s2846_s14  ;;  %v1290_v60 = vsel %vm541_vm6, %v1289_v50, %v1276_v19 }
 0x169   : > { %1473 = vrot.lane.b32.xlu0 %v1454_v58, %s2848_s30  ;;  %v1291_v11 = vsel %vm543_vm7, %v1290_v60, %v1280_v55 }
 0x16b   : > { %v1284_v20 = vpop.permute.xlu1 %1283  ;;  %v507_v22 = vpop.permute.xlu0 %506 }
 0x16c   : > { %911 = vrot.lane.b32.xlu1 %v892_v12, %s2848_s30  ;;  %v1292_v24 = vsel %vm545_vm8, %v1291_v11, %v1284_v20  ;;  %v534_v29 = vsel %vm533_vm2, %v3345_v13, %v507_v22  ;;  %v1071_v13 = vrot.slane %v1057_v28, %v3260_v43  ;;  %v2039_v28 = vcombine.low %v2006_v38, %v2022_v37  ;;  %v627_v11 = vld [vmem:[#allocation2 + $0x4] sm:$0xf] }
 0x16d   : > { %895 = vrot.lane.b32.xlu0 %v890_v21, %s2844_s27  ;;  %2426 = vmatpush3.msk.msra.mxu0 %vm551_vm9, %v1292_v24 }
 0x16e   : > { %2428 = vmatmul.mubr.msk.f32.vlgmr.msra.gmra.mrb[0].mxu0 %vm547_vm10, %v1189_v23  ;;  %2430 = vmatprep.subr.mxu0 %v2839_v0  ;;  %v1075_v44 = vcombine.high %v1071_v13, %v2839_v0  ;;  %v2047_v57 = vrot.slane %v2039_v28, %v3260_v43 }
 0x16f   : > { %v515_v30 = vpop.permute.xlu1 %514  ;;  %2432 = vmatprep.mubr.msk.f32.mxu0 %vm2850_vm1, %v2839_v0  ;;  %v511_v34 = vpop.permute.xlu0 %510 }
 0x170   : > { %919 = vrot.lane.b32.xlu1 %v893_v27, %s2849_s20  ;;  %v536_v36 = vsel %vm535_vm3, %v534_v29, %v511_v34  ;;  %v2057_v8 = vcombine.high %v2047_v57, %v2839_v0 }
 0x171   : > { %2064 = vrot.lane.b32.xlu0 %v2038_v31, %s2843_s26  ;;  %v538_v62 = vsel %vm537_vm4, %v536_v36, %v515_v30 }
 0x173   : > { %v519_v41 = vpop.permute.xlu1 %518  ;;  %v698_v17 = vpop.permute.xlu0 %697 }
 0x174   : > { %1097 = vrot.lane.b32.xlu1 %v1071_v13, %s2847_s15  ;;  %v540_v48 = vsel %vm539_vm5, %v538_v62, %v519_v41  ;;  %v724_v43 = vsel %vm533_vm2, %v3377_v33, %v698_v17 }
 0x175   : > { %2060 = vrot.lane.b32.xlu0 %v2055_v42, %s2844_s27 }
 0x177   : > { %v523_v45 = vpop.permute.xlu1 %522  ;;  %v702_v3 = vpop.permute.xlu0 %701 }
 0x178   : > { %1101 = vrot.lane.b32.xlu1 %v1075_v44, %s2849_s20  ;;  %v542_v52 = vsel %vm541_vm6, %v540_v48, %v523_v45  ;;  %v725_v16 = vsel %vm535_vm3, %v724_v43, %v702_v3  ;;  %v1371_v43 = vld [vmem:[#allocation2 + $0x14] sm:$0xf] }
 0x179   : > { %2068 = vrot.lane.b32.xlu0 %v2056_v46, %s2846_s14 }
 0x17b   : > { %v527_v56 = vpop.permute.xlu1 %526  ;;  %v1661_v1 = vpop.permute.xlu0 %1660 }
 0x17c   : > { %2080 = vrot.lane.b32.xlu1 %v2054_v49, %s2847_s15  ;;  %v544_v6 = vsel %vm543_vm7, %v542_v52, %v527_v56  ;;  %v1687_v42 = vsel %vm533_vm2, %v3396_v54, %v1661_v1 }
 0x17d   : > { %2072 = vrot.lane.b32.xlu0 %v2047_v57, %s2845_s13 }
 0x17f   : > { %v531_v7 = vpop.permute.xlu1 %530  ;;  %v1665_v10 = vpop.permute.xlu0 %1664 }
 0x180   : > { %v546_v39 = vsel %vm545_vm8, %v544_v6, %v531_v7  ;;  %433 = vperm.xlu1 %2565, %v430_v4   ;;  %v1688_v2 = vsel %vm535_vm3, %v1687_v42, %v1665_v10 }
 0x181   : > { %2076 = vrot.lane.b32.xlu0 %v2057_v8, %s2848_s30  ;;  %2406 = vmatpush3.msk.msra.mxu1 %vm551_vm9, %v546_v39 }
 0x182   : > { %2410 = vmatprep.subr.mxu1 %v2839_v0  ;;  %2408 = vmatmul.mubr.msk.f32.vlgmr.msra.gmra.mrb[0].mxu1 %vm547_vm10, %v436_v9 }
 0x183   : > { %v706_v18 = vpop.permute.xlu1 %705  ;;  %2412 = vmatprep.mubr.msk.f32.mxu1 %vm2850_vm1, %v2839_v0  ;;  %v1669_v58 = vpop.permute.xlu0 %1668 }
 0x184   : > { %v726_v50 = vsel %vm537_vm4, %v725_v16, %v706_v18  ;;  %v1689_v46 = vsel %vm537_vm4, %v1688_v2, %v1669_v58  ;;  %v1978_v2 = vld [vmem:[#allocation2 + $0x20] sm:$0xf] }
 0x185   : > { %2084 = vrot.lane.b32.xlu0 %v2058_v61, %s2849_s20 }
 0x187   : > { %v710_v47 = vpop.permute.xlu1 %709  ;;  %v1673_v14 = vpop.permute.xlu0 %1672 }
 0x188   : > { %v727_v33 = vsel %vm539_vm5, %v726_v50, %v710_v47  ;;  %v1690_v52 = vsel %vm539_vm5, %v1689_v46, %v1673_v14  ;;  %v1569_v14 = vld [vmem:[#allocation2 + $0x18] sm:$0xf] }
 0x18b   : > { %v714_v40 = vpop.permute.xlu1 %713  ;;  %v1677_v15 = vpop.permute.xlu0 %1676 }
 0x18c   : > { %v728_v51 = vsel %vm541_vm6, %v727_v33, %v714_v40  ;;  %v1691_v3 = vsel %vm541_vm6, %v1690_v52, %v1677_v15 }
 0x18f   : > { %v718_v55 = vpop.permute.xlu1 %717  ;;  %v1867_v20 = vpop.permute.xlu0 %1866 }
 0x190   : > { %v729_v19 = vsel %vm543_vm7, %v728_v51, %v718_v55  ;;  %v1893_v17 = vsel %vm533_vm2, %v3439_v35, %v1867_v20 }
 0x193   : > { %v722_v60 = vpop.permute.xlu1 %721  ;;  %v1871_v22 = vpop.permute.xlu0 %1870 }
 0x194   : > { %v730_v12 = vsel %vm545_vm8, %v729_v19, %v722_v60  ;;  %v1894_v63 = vsel %vm535_vm3, %v1893_v17, %v1871_v22 }
 0x195   : > { %2411 = vmatpush3.msk.msra.mxu1 %vm551_vm9, %v730_v12  ;;  %v809_v12 = vld [vmem:[#allocation2 + $0x8] sm:$0xf] }
 0x196   : > { %2413 = vmatmul.mubr.msk.f32.vlgmr.msra.gmra.mrb[0].mxu1 %vm547_vm10, %v627_v11  ;;  %2415 = vmatprep.subr.mxu1 %v2839_v0 }
 0x197   : > { %2417 = vmatprep.mubr.msk.f32.mxu1 %vm2850_vm1, %v2839_v0  ;;  %v1681_v21 = vpop.permute.xlu1 %1680  ;;  %v1875_v24 = vpop.permute.xlu0 %1874 }
 0x198   : > { %v1692_v8 = vsel %vm543_vm7, %v1691_v3, %v1681_v21 }
 0x19b   : > { %v1685_v23 = vpop.permute.xlu1 %1684  ;;  %v1879_v26 = vpop.permute.xlu0 %1878 }
 0x19c   : > { %v1693_v47 = vsel %vm545_vm8, %v1692_v8, %v1685_v23 }
 0x19f   : > { %v1887_v25 = vpop.permute.xlu1 %1886  ;;  %v1883_v30 = vpop.permute.xlu0 %1882 }
 0x1a3   : > { %v3623_v27 = vpop.permute.xlu1 %1890  ;;  %v1078_v31 = vpop.permute.xlu0 %1077 }
 0x1a4   : > { %v1104_v9 = vsel %vm533_vm2, %v3472_v5, %v1078_v31  ;;  %v1772_v31 = vld [vmem:[#allocation2 + $0x1c] sm:$0xf] }
 0x1a7   : > { %v1086_v29 = vpop.permute.xlu1 %1085  ;;  %v1082_v34 = vpop.permute.xlu0 %1081 }
 0x1a8   : > { %v1105_v50 = vsel %vm535_vm3, %v1104_v9, %v1082_v34 }
 0x1ab   : > { %v1090_v13 = vpop.permute.xlu1 %1089 }
 0x1af   : > { %v3625_v36 = vpop.permute.xlu1 %1093 }
 0x1c6   : > { %v1478_v38 = vpop.permute.xlu1 %1477 }
 0x1c7   : > { %v1462_v37 = vpop.permute.xlu0 %1461 }
 0x1cb   : > { %v1470_v41 = vpop.permute.xlu0 %1469 }
 0x1ce   : > { %v908_v44 = vpop.permute.xlu1 %907 }
 0x1cf   : > { %v900_v62 = vpop.permute.xlu0 %899 }
 0x1d2   : > { %v916_v28 = vpop.permute.xlu1 %915 }
 0x1d3   : > { %v1458_v45 = vpop.permute.xlu0 %1457 }
 0x1d4   : > { %v1484_v48 = vsel %vm533_vm2, %v3518_v53, %v1458_v45  ;;  %v1895_v53 = vsel %vm537_vm4, %v1894_v63, %v1875_v24 }
 0x1d5   : > { %v1485_v56 = vsel %vm535_vm3, %v1484_v48, %v1462_v37  ;;  %v1896_v1 = vsel %vm539_vm5, %v1895_v53, %v1879_v26 }
 0x1d6   : > { %v1482_v49 = vpop.permute.xlu1 %1481  ;;  %v1897_v33 = vsel %vm541_vm6, %v1896_v1, %v1883_v30  ;;  %v1007_v30 = vld [vmem:[#allocation2 + $0xc] sm:$0xf] }
 0x1d7   : > { %v1466_v54 = vpop.permute.xlu0 %1465  ;;  %v1898_v60 = vsel %vm543_vm7, %v1897_v33, %v1887_v25 }
 0x1d8   : > { %v1486_v57 = vsel %vm537_vm4, %v1485_v56, %v1466_v54  ;;  %v1899_v23 = vsel %vm545_vm8, %v1898_v60, %v3623_v27 }
 0x1d9   : > { %v1487_v4 = vsel %vm539_vm5, %v1486_v57, %v1470_v41 }
 0x1da   : > { %v904_v6 = vpop.permute.xlu1 %903 }
 0x1db   : > { %v1474_v7 = vpop.permute.xlu0 %1473 }
 0x1dc   : > { %v1488_v35 = vsel %vm541_vm6, %v1487_v4, %v1474_v7 }
 0x1dd   : > { %v1489_v39 = vsel %vm543_vm7, %v1488_v35, %v1478_v38 }
 0x1de   : > { %v912_v18 = vpop.permute.xlu1 %911  ;;  %v1490_v61 = vsel %vm545_vm8, %v1489_v39, %v1482_v49 }
 0x1df   : > { %2431 = vmatpush3.msk.msra.mxu0 %vm551_vm9, %v1490_v61  ;;  %v896_v16 = vpop.permute.xlu0 %895 }
 0x1e0   : > { %v922_v10 = vsel %vm533_vm2, %v3547_v59, %v896_v16  ;;  %2433 = vmatmul.mubr.msk.f32.vlgmr.msra.gmra.mrb[0].mxu0 %vm547_vm10, %v1371_v43  ;;  %2435 = vmatprep.subr.mxu0 %v2839_v0  ;;  %v1106_v59 = vsel %vm537_vm4, %v1105_v50, %v1086_v29 }
 0x1e1   : > { %v923_v5 = vsel %vm535_vm3, %v922_v10, %v900_v62  ;;  %2436 = vmatpush3.msk.msra.mxu0 %vm551_vm9, %v1693_v47  ;;  %2437 = vmatprep.mubr.msk.f32.mxu0 %vm2850_vm1, %v2839_v0  ;;  %v1107_v15 = vsel %vm539_vm5, %v1106_v59, %v1090_v13 }
 0x1e2   : > { %v924_v40 = vsel %vm537_vm4, %v923_v5, %v904_v6  ;;  %v920_v51 = vpop.permute.xlu1 %919  ;;  %2440 = vmatprep.subr.mxu0 %v2839_v0  ;;  %v1108_v24 = vsel %vm541_vm6, %v1107_v15, %v3625_v36 }
 0x1e3   : > { %v925_v55 = vsel %vm539_vm5, %v924_v40, %v908_v44  ;;  %v2065_v58 = vpop.permute.xlu0 %2064 }
 0x1e4   : > { %v926_v19 = vsel %vm541_vm6, %v925_v55, %v912_v18 }
 0x1e5   : > { %v927_v11 = vsel %vm543_vm7, %v926_v19, %v916_v28 }
 0x1e6   : > { %v928_v20 = vsel %vm545_vm8, %v927_v11, %v920_v51  ;;  %v1098_v21 = vpop.permute.xlu1 %1097 }
 0x1e7   : > { %2416 = vmatpush3.msk.msra.mxu1 %vm551_vm9, %v928_v20  ;;  %v2061_v22 = vpop.permute.xlu0 %2060  ;;  %v1109_v25 = vsel %vm543_vm7, %v1108_v24, %v1098_v21 }
 0x1e8   : > { %2418 = vmatmul.mubr.msk.f32.vlgmr.msra.gmra.mrb[0].mxu1 %vm547_vm10, %v809_v12  ;;  %2438 = vmatmul.mubr.msk.f32.vlgmr.msra.gmra.mrb[0].mxu0 %vm547_vm10, %v1569_v14  ;;  %v2087_v13 = vsel %vm533_vm2, %v3571_v32, %v2061_v22 }
 0x1e9   : > { %2441 = vmatpush3.msk.msra.mxu0 %vm551_vm9, %v1899_v23  ;;  %2420 = vmatprep.subr.mxu1 %v2839_v0  ;;  %v2088_v36 = vsel %vm535_vm3, %v2087_v13, %v2065_v58 }
 0x1ea   : > { %v1102_v26 = vpop.permute.xlu1 %1101  ;;  %2422 = vmatprep.mubr.msk.f32.mxu1 %vm2850_vm1, %v2839_v0  ;;  %2442 = vmatprep.mubr.msk.f32.mxu0 %vm2850_vm1, %v2839_v0 }
 0x1eb   : > { %v1110_v27 = vsel %vm545_vm8, %v1109_v25, %v1102_v26  ;;  %v2069_v29 = vpop.permute.xlu0 %2068  ;;  %2445 = vmatprep.subr.mxu0 %v2839_v0 }
 0x1ec   : > { %2421 = vmatpush3.msk.msra.mxu1 %vm551_vm9, %v1110_v27  ;;  %v2089_v37 = vsel %vm537_vm4, %v2088_v36, %v2069_v29 }
 0x1ee   : > { %v2081_v32 = vpop.permute.xlu1 %2080 }
 0x1ef   : > { %v2073_v34 = vpop.permute.xlu0 %2072 }
 0x1f0   : > { %2423 = vmatmul.mubr.msk.f32.vlgmr.msra.gmra.mrb[0].mxu1 %vm547_vm10, %v1007_v30  ;;  %2443 = vmatmul.mubr.msk.f32.vlgmr.msra.gmra.mrb[0].mxu0 %vm547_vm10, %v1772_v31  ;;  %v2090_v38 = vsel %vm539_vm5, %v2089_v37, %v2073_v34 }
 0x1f1   : > { %2447 = vmatprep.mubr.msk.f32.mxu0 %vm2850_vm1, %v2839_v0 }
 0x1f3   : > { %v2077_v41 = vpop.permute.xlu0 %2076 }
 0x1f4   : > { %v2091_v42 = vsel %vm541_vm6, %v2090_v38, %v2077_v41 }
 0x1f5   : > { %v2092_v44 = vsel %vm543_vm7, %v2091_v42, %v2081_v32 }
 0x1f7   : > { %v2085_v62 = vpop.permute.xlu0 %2084 }
 0x1f8   : > { %v2093_v28 = vsel %vm545_vm8, %v2092_v44, %v2085_v62 }
 0x1f9   : > { %2446 = vmatpush3.msk.msra.mxu0 %vm551_vm9, %v2093_v28 }
 0x1fa   : > { %2448 = vmatmul.mubr.msk.f32.vlgmr.msra.gmra.mrb[0].mxu0 %vm547_vm10, %v1978_v2 }
 0x1ff   : > { %v434_v46 = vpop.permute.xlu1 %433 }
 0x2c3   : > { %v1183_v0 = vpop.f32.mrb[0].mxu1 }
 0x2c4   : > { %v2424_v45 = vpop.f32.mrb[1].mxu1  ;;  %v2450_v48 = vadd.f32 %v1183_v0, %v434_v46 }
 0x2cd   : > { %v2166_v17 = vpop.f32.mrb[0].mxu0 }
 0x2ce   : > { %v2451_v49 = vadd.f32 %v2450_v48, %v2166_v17  ;;  %v2449_v52 = vpop.f32.mrb[1].mxu0 }
 0x2d0   : > { %2172 = vst.msk [vmem:[%s405_s18] sm:$0xf] %vm2171_vm11, %v2451_v49 }
 0x2d1   : > { %2766 = shalt.err (!%p2763_p7)
}
 0x2d2   : > { %s2767_s12 = scalar_lea.hbm %s3706_s11, 64  ;;  %s2771_s4 = scalar_lea.hbm %s3756_s6, 128 }
 0x2d3   : > { %p2768_p6 = scmp.ne.s32.totalorder %s3706_s11, %s2767_s12  ;;  %p2772_p11 = scmp.lt.u32.totalorder %s3706_s11, %s3756_s6 }
 0x2d4   : > { %p2773_p10 = scmp.lt.u32.totalorder %s2771_s4, %s2767_s12  ;;  %p2775_p1 = scmp.lt.u32.totalorder %s2767_s12, %s3706_s11 }
 0x2d5   : > { %p2769_p8 = pnand %p2768_p6, %p3804_p0 }
 0x2d6   : > { %p2774_p12 = por %p2773_p10, %p2772_p11 }
 0x2d7   : > { %p2770_p9 = pneg %p2769_p8 }
 0x2d8   : > { %p2776_p5 = por %p2775_p1, %p2774_p12 }
 0x2da   : > { %p2777_p4 = pnand %p2776_p5, %p2770_p9 }
 0x2dc   : > { %2780 = shalt.err (!%p2777_p4)
}
 0x2dd   : > { %2482 = dma.vmem_to_hbm [thread:$0]  (%p3804_p0), %s3708_s0, 64, %s3706_s11, %s2174_s17  }
 0x2de PF: > { %s3805_s13 = sld [smem:[#allocation18_spill]]  ;;  %s2199_s14 = sand.u32 1, %s2815_s21  }
 0x2df   : > { %p3807_p13 = scmp.ge.s32.totalorder %s2827_s24, 2  ;;  %s2200_s15 = scalar_lea.sflag [#allocation4], %s2199_s14 }
 0x2e4   : > { %p3806_p3 = scmp.ne.s32.totalorder %s3805_s13, 0 }
 0x2e6   : > { %p2505_p2 = pnand %p3807_p13, %p3806_p3 }
 0x2e8   : > { %2810 = dma.done.wait (!%p2505_p2), %s2200_s15, 64  }
 0x2e9   : > { %2812 = vsyncadd (!%p2505_p2), %s2200_s15, 4294967232  ;;  %s3808_s24 = sld [smem:[#allocation16_spill]]  ;;  %s3809_s30 = sld [smem:[#allocation17_spill]] }
 0x2ea   : > { %s3810_s21 = smov %s2819_s22  ;;  %s3811_s22 = smov %s2823_s23 }
 0x2ef   : > { %p18_p7 = scmp.ge.s32.totalorder %s3808_s24, 4   ;;  %s3812_s23 = smov %s3809_s30 }
 0x2f1   :  { %20 = sbr.rel (!%p18_p7) target bundleno = 10 (0xa), region = 137 }
 0x2f8   :  { %2205 = vsyncpa [#allocation3], 1 }
 0x2f9   :  { %2207 = vsyncpa [#allocation3 + $0x1], 1 }
 0x2fa   :  { %2208 = vsyncpa [#allocation6], 1 }
 0x2fb   :  { %2209 = vsyncpa [#allocation4], 1 }
 0x2fc   :  { %2211 = vsyncpa [#allocation4 + $0x1], 1 }

</bundles_post_ra>
